<compile_context>
chip_gen: v7x
topology: tpu7x:2x2x1
jax: 0.10.0
libtpu: 0.0.40
codegen_flags: <defaults>
</compile_context>

<pallas_src>
import math

import jax
import jax.numpy as jnp
from jax.experimental import pallas as pl
from jax.experimental.pallas import tpu as pltpu

# ---- line-search hyper-parameters (module __init__ args) --------------------
MAX_STEP_SIZE = 16.0
ZOOM_ITERATIONS = 5
SUFFICIENT_DECREASE = 1e-4          # c1
CURVATURE = 0.9                     # c2
WIDEN_ITERATIONS = int(math.ceil(math.log2(MAX_STEP_SIZE)))

LANE = 128                          # TPU lane width


def _interpolate_alpha(lower_alpha, upper_alpha, lower_grad, upper_grad):
    # TODO(synk): interpolate_alpha was not provided with the reference module;
    # using secant interpolation with a bisection fallback, clamped to the
    # current bracket.
    denom = upper_grad - lower_grad
    safe = jnp.abs(denom) > 1e-12
    secant = upper_alpha - upper_grad * (upper_alpha - lower_alpha) / jnp.where(
        safe, denom, jnp.float32(1.0)
    )
    mid = 0.5 * (lower_alpha + upper_alpha)
    alpha = jnp.where(safe, secant, mid)
    lo = jnp.minimum(lower_alpha, upper_alpha)
    hi = jnp.maximum(lower_alpha, upper_alpha)
    return jnp.clip(alpha, lo, hi)


# ---------------------------------------------------------------------------
# Alpha-space strong-Wolfe search (per-row scalars, any broadcastable shape).
# Error terms are expressed as deltas from the base error, so the constant
# A = sum d*(x0-c)^2 cancels and never has to be computed.
# Returns (point_alpha, step_alpha): alpha of the output *point* and of the
# output *step*.  They differ only for rows still "widening" at the end (the
# reference module doubles upper_alpha after the point was last materialised).
# ---------------------------------------------------------------------------
def _alpha_line_search(b_sum, c_sum, error_scale):
    c1 = SUFFICIENT_DECREASE
    c2 = CURVATURE
    max_step = MAX_STEP_SIZE

    def delta_err(alpha):                       # err(alpha) - err(0)
        return error_scale * (alpha * b_sum + 0.5 * alpha * alpha * c_sum)

    def dgrad(alpha):                           # directional gradient
        return error_scale * (b_sum + alpha * c_sum)

    zeros = jnp.zeros_like(b_sum)
    base_gradient = error_scale * b_sum

    lower_alpha = zeros
    upper_alpha = jnp.ones_like(b_sum)
    upper_point_alpha = zeros                   # alpha of the materialised upper point
    out_alpha = zeros
    prev_delta = zeros
    widening = jnp.ones(b_sum.shape, dtype=jnp.bool_)
    zooming = jnp.zeros(b_sum.shape, dtype=jnp.bool_)

    # -------------------- widening phase (algorithm 3.5) --------------------
    for idx in range(WIDEN_ITERATIONS):
        upper_point_alpha = jnp.where(widening, upper_alpha, upper_point_alpha)
        d_err = delta_err(upper_point_alpha)

        increasing = d_err > c1 * upper_alpha * base_gradient
        if idx > 0:
            increasing = jnp.logical_or(increasing, d_err >= prev_delta)
        increasing = jnp.logical_and(widening, increasing)
        zooming = jnp.logical_or(zooming, increasing)
        widening = jnp.logical_and(widening, jnp.logical_not(increasing))

        gradient = dgrad(upper_point_alpha)
        met = jnp.logical_and(widening, jnp.abs(gradient) <= -c2 * base_gradient)
        out_alpha = jnp.where(met, upper_alpha, out_alpha)
        widening = jnp.logical_and(widening, jnp.logical_not(met))

        swapping = jnp.logical_and(widening, gradient >= 0.0)
        zooming = jnp.logical_or(zooming, swapping)
        new_upper = jnp.where(swapping, lower_alpha, upper_alpha)
        new_lower = jnp.where(swapping, upper_alpha, lower_alpha)
        upper_point_alpha = jnp.where(swapping, lower_alpha, upper_point_alpha)
        upper_alpha, lower_alpha = new_upper, new_lower
        widening = jnp.logical_and(widening, jnp.logical_not(swapping))

        lower_alpha = jnp.where(widening, upper_alpha, lower_alpha)
        upper_alpha = jnp.where(
            widening, jnp.minimum(2.0 * upper_alpha, max_step), upper_alpha
        )
        # NOTE: upper_point_alpha deliberately NOT refreshed after doubling —
        # the reference module only evaluates the doubled alpha next iteration.
        prev_delta = d_err

    # ---------------------- zoom phase (algorithm 3.6) ----------------------
    for _ in range(ZOOM_ITERATIONS):
        lower_gradient = dgrad(lower_alpha)
        upper_gradient = dgrad(upper_alpha)
        candidate_alpha = _interpolate_alpha(
            lower_alpha, upper_alpha, lower_gradient, upper_gradient
        )
        candidate_alpha = jnp.where(zooming, candidate_alpha, 0.0)

        lower_delta = delta_err(lower_alpha)
        d_err = delta_err(candidate_alpha)
        increasing = jnp.logical_and(
            zooming, d_err > c1 * candidate_alpha * base_gradient
        )
        increasing = jnp.logical_and(
            zooming, jnp.logical_or(d_err >= lower_delta, increasing)
        )
        upper_alpha = jnp.where(increasing, candidate_alpha, upper_alpha)
        upper_point_alpha = jnp.where(increasing, candidate_alpha, upper_point_alpha)

        non_increasing = jnp.logical_and(zooming, jnp.logical_not(increasing))
        gradient = dgrad(candidate_alpha)
        met = jnp.logical_and(
            non_increasing, jnp.abs(gradient) <= -c2 * base_gradient
        )
        out_alpha = jnp.where(met, candidate_alpha, out_alpha)
        zooming = jnp.logical_and(zooming, jnp.logical_not(met))

        reversed_gradient = gradient * (upper_alpha - lower_alpha) >= 0.0
        swapping = jnp.logical_and(
            non_increasing, jnp.logical_and(reversed_gradient, zooming)
        )
        upper_alpha = jnp.where(swapping, lower_alpha, upper_alpha)
        upper_point_alpha = jnp.where(swapping, lower_alpha, upper_point_alpha)

        non_increasing = jnp.logical_and(non_increasing, zooming)
        lower_alpha = jnp.where(non_increasing, candidate_alpha, lower_alpha)

    unfinished = jnp.logical_or(zooming, widening)
    point_alpha = jnp.where(unfinished, upper_point_alpha, out_alpha)
    step_alpha = jnp.where(unfinished, upper_alpha, out_alpha)
    return point_alpha, step_alpha


# ----------------------------- Pallas wrapper --------------------------------
def line_search_pallas(x0, dirn, dq, cq):
    """x0, dirn, dq, cq: (N, P) float32.  Returns (x_out, output_step), (N, P)."""
    n, p = x0.shape
    f32 = jnp.float32
    error_scale = float(math.sqrt(1.0 / p))       # uses the TRUE num_parameters

    x0 = x0.astype(f32)
    dirn = dirn.astype(f32)
    dq = dq.astype(f32)
    cq = cq.astype(f32)

    # ---- per-generation VMEM budget -> row tile -----------------------------
    vmem_cap = 64 * 1024 * 1024                   # conservative fallback
    try:
        info = pltpu.get_tpu_info()
        cap = getattr(info, "vmem_capacity_bytes", None)
        if cap:
            vmem_cap = int(cap)
    except Exception:
        pass
    if vmem_cap <= 80 * 1024 * 1024:              # v7x-class: 64 MiB/TC, 2 TCs
        budget = int(vmem_cap * 0.65)
        vmem_limit = int(vmem_cap * 0.80)
        multi_core = True
    else:                                         # v5e / v6e: 128 MiB, single TC
        budget = int(vmem_cap * 0.78)
        vmem_limit = int(vmem_cap * 0.88)
        multi_core = False

    # ~2 pipeline buffers x (4 inputs + 2 outputs) + compiler headroom
    live_tiles = 14
    rows_budget = max(8, budget // (live_tiles * 4 * p))
    if rows_budget >= LANE:
        row_tile = min(1024, (rows_budget // LANE) * LANE)
    else:
        row_tile = max(8, (rows_budget // 8) * 8)

    if n <= row_tile:
        if multi_core and n >= 512:
            # keep two grid steps so both v7x TensorCores get >=256-row tiles
            row_tile = min(row_tile, (((n + 1) // 2 + LANE - 1) // LANE) * LANE)
        else:
            row_tile = n                          # single full-extent block
    grid = pl.cdiv(n, row_tile)
    n_rows = n

    def kernel(x0_ref, dir_ref, d_ref, c_ref, xout_ref, step_ref):
        block_rows = x0_ref.shape[0]

        # 128x128 identity used to move per-row scalars between the sublane
        # (reduction output) layout and the lane-dense (alpha-loop) layout.
        rr = jax.lax.broadcasted_iota(jnp.int32, (LANE, LANE), 0)
        cc = jax.lax.broadcasted_iota(jnp.int32, (LANE, LANE), 1)
        eye = (rr == cc).astype(f32)

        # The only full-width work: 2 lane reductions (+ the output FMAs below).
        dir_full = dir_ref[...]
        dd = d_ref[...] * dir_full
        b_col = jnp.sum(dd * (x0_ref[...] - c_ref[...]), axis=-1, keepdims=True)
        c_col = jnp.sum(dd * dir_full, axis=-1, keepdims=True)

        # Rows past the end of the logical array (partial last block) contain
        # unspecified data; zero their reductions so NaN/Inf cannot leak into
        # valid lanes through the eye-mask conversions below.
        rows_left = n_rows - pl.program_id(0) * block_rows
        row_ids = jax.lax.broadcasted_iota(jnp.int32, (block_rows, 1), 0)
        in_bounds = row_ids < rows_left
        b_col = jnp.where(in_bounds, b_col, 0.0)
        c_col = jnp.where(in_bounds, c_col, 0.0)

        # Per 128-row chunk: pack -> lane-dense alpha search -> unpack -> FMA.
        for start in range(0, block_rows, LANE):
            m = min(LANE, block_rows - start)
            sl = slice(start, start + m)
            eye_m = eye[:m, :]

            # pack: (m,1) column -> (1,128) lane-dense row (exact: one nonzero
            # term per lane, all others multiplied by 0.0)
            b_row = jnp.sum(b_col[sl, :] * eye_m, axis=0, keepdims=True)
            c_row = jnp.sum(c_col[sl, :] * eye_m, axis=0, keepdims=True)

            point_row, step_row = _alpha_line_search(b_row, c_row, error_scale)

            # unpack: (1,128) row -> (m,1) column
            point_col = jnp.sum(point_row * eye_m, axis=-1, keepdims=True)
            step_col = jnp.sum(step_row * eye_m, axis=-1, keepdims=True)

            dir_chunk = dir_ref[sl, :]
            xout_ref[sl, :] = x0_ref[sl, :] + point_col * dir_chunk
            step_ref[sl, :] = step_col * dir_chunk

    io_spec = pl.BlockSpec((row_tile, p), lambda i: (i, 0))

    x_out, output_step = pl.pallas_call(
        kernel,
        out_shape=(
            jax.ShapeDtypeStruct((n, p), f32),
            jax.ShapeDtypeStruct((n, p), f32),
        ),
        grid_spec=pltpu.PrefetchScalarGridSpec(
            num_scalar_prefetch=0,
            grid=(grid,),
            in_specs=[io_spec, io_spec, io_spec, io_spec],
            out_specs=[io_spec, io_spec],
        ),
        compiler_params=pltpu.CompilerParams(
            dimension_semantics=("parallel",),
            vmem_limit_bytes=vmem_limit,
        ),
    )(x0, dirn, dq, cq)
    return x_out, output_step


# --------------------- pure-JAX full-width reference --------------------------
def _line_search_reference(x0, dirn, dq, cq):
    """Full (N, P) state-tracking reference (mirrors the PyTorch module)."""
    n, p = x0.shape
    f32 = jnp.float32
    error_scale = f32(math.sqrt(1.0 / p))
    c1 = f32(SUFFICIENT_DECREASE)
    c2 = f32(CURVATURE)
    max_step = f32(MAX_STEP_SIZE)

    def f_error(x):
        diff = x - cq
        return 0.5 * jnp.sum(dq * diff * diff, axis=-1, keepdims=True)

    def f_grad(x):
        return dq * (x - cq)

    def dir_grad(x):
        return jnp.sum(error_scale * f_grad(x) * dirn, axis=-1, keepdims=True)

    base_error = error_scale * f_error(x0)
    base_gradient = dir_grad(x0)

    lower_alpha = jnp.zeros((n, 1), f32)
    upper_alpha = jnp.ones((n, 1), f32)
    x_lower = x0
    x_upper = x0
    x_out = x0
    output_step = jnp.zeros_like(dirn)
    prev_error = base_error
    widening = jnp.ones((n, 1), jnp.bool_)
    zooming = jnp.zeros((n, 1), jnp.bool_)

    for idx in range(WIDEN_ITERATIONS):
        candidate_step = upper_alpha * dirn
        candidate_x = x0 + candidate_step
        x_upper = jnp.where(widening, candidate_x, x_upper)

        error = error_scale * f_error(x_upper)
        increasing_error = error > base_error + c1 * upper_alpha * base_gradient
        if idx > 0:
            increasing_error = jnp.logical_or(increasing_error, error >= prev_error)
        increasing_error = jnp.logical_and(widening, increasing_error)
        zooming = jnp.logical_or(zooming, increasing_error)
        widening = jnp.logical_and(widening, jnp.logical_not(increasing_error))

        gradient = dir_grad(x_upper)
        met_conditions = jnp.logical_and(
            widening, jnp.abs(gradient) <= -c2 * base_gradient
        )
        x_out = jnp.where(met_conditions, x_upper, x_out)
        output_step = jnp.where(met_conditions, candidate_step, output_step)
        widening = jnp.logical_and(widening, jnp.logical_not(met_conditions))

        swapping = jnp.logical_and(widening, gradient >= 0.0)
        zooming = jnp.logical_or(zooming, swapping)
        new_upper_alpha = jnp.where(swapping, lower_alpha, upper_alpha)
        new_lower_alpha = jnp.where(swapping, upper_alpha, lower_alpha)
        upper_alpha, lower_alpha = new_upper_alpha, new_lower_alpha
        new_x_lower = jnp.where(swapping, x_upper, x_lower)
        new_x_upper = jnp.where(swapping, x_lower, x_upper)
        x_lower, x_upper = new_x_lower, new_x_upper
        widening = jnp.logical_and(widening, jnp.logical_not(swapping))

        lower_alpha = jnp.where(widening, upper_alpha, lower_alpha)
        upper_alpha = jnp.where(
            widening, jnp.minimum(2.0 * upper_alpha, max_step), upper_alpha
        )
        x_lower = jnp.where(widening, x_upper, x_lower)
        prev_error = error

    for _ in range(ZOOM_ITERATIONS):
        lower_gradient = dir_grad(x_lower)
        upper_gradient = dir_grad(x_upper)
        candidate_alpha = _interpolate_alpha(
            lower_alpha, upper_alpha, lower_gradient, upper_gradient
        )
        candidate_alpha_wide = jnp.where(zooming, candidate_alpha, 0.0)
        candidate_step = jnp.where(zooming, candidate_alpha_wide * dirn, 0.0)
        candidate_x = x0 + candidate_step

        lower_error = error_scale * f_error(x_lower)
        error = error_scale * f_error(candidate_x)
        increasing_error = jnp.logical_and(
            zooming,
            error > base_error + c1 * candidate_alpha_wide * base_gradient,
        )
        increasing_error = jnp.logical_and(
            zooming, jnp.logical_or(error >= lower_error, increasing_error)
        )
        upper_alpha = jnp.where(increasing_error, candidate_alpha_wide, upper_alpha)
        x_upper = jnp.where(increasing_error, candidate_x, x_upper)

        non_increasing_error = jnp.logical_and(
            zooming, jnp.logical_not(increasing_error)
        )
        gradient = dir_grad(candidate_x)
        met_conditions = jnp.logical_and(
            non_increasing_error, jnp.abs(gradient) <= -c2 * base_gradient
        )
        x_out = jnp.where(met_conditions, candidate_x, x_out)
        output_step = jnp.where(met_conditions, candidate_step, output_step)
        zooming = jnp.logical_and(zooming, jnp.logical_not(met_conditions))

        reversed_gradient = gradient * (upper_alpha - lower_alpha) >= 0.0
        swapping = jnp.logical_and(
            non_increasing_error, jnp.logical_and(reversed_gradient, zooming)
        )
        upper_alpha = jnp.where(swapping, lower_alpha, upper_alpha)
        x_upper = jnp.where(swapping, x_lower, x_upper)

        non_increasing_error = jnp.logical_and(non_increasing_error, zooming)
        lower_alpha = jnp.where(non_increasing_error, candidate_alpha_wide, lower_alpha)
        x_lower = jnp.where(non_increasing_error, candidate_x, x_lower)

    unfinished = jnp.logical_or(zooming, widening)
    x_out = jnp.where(unfinished, x_upper, x_out)
    output_step = jnp.where(unfinished, upper_alpha * dirn, output_step)
    return x_out, output_step


if __name__ == "__main__":
    B, E, P = 2, 8, 32        # batch_size, num_estimates, num_parameters
    key = jax.random.PRNGKey(0)
    k1, k2, k3 = jax.random.split(key, 3)

    x0 = jax.random.normal(k1, (B, E, P), jnp.float32)
    dq = jax.nn.softplus(jax.random.normal(k2, (B, E, P), jnp.float32)) + 0.1
    cq = jax.random.normal(k3, (B, E, P), jnp.float32)
    # descent direction: steepest descent on the quadratic at x0
    search_direction = -(dq * (x0 - cq))

    x0_f = x0.reshape(B * E, P)
    dir_f = search_direction.reshape(B * E, P)
    dq_f = dq.reshape(B * E, P)
    cq_f = cq.reshape(B * E, P)

    line_search = jax.jit(line_search_pallas)
    x_out_f, step_f = line_search(x0_f, dir_f, dq_f, cq_f)
    output_function_params = x_out_f.reshape(B, E, P)
    output_step = step_f.reshape(B, E, P)
    jax.block_until_ready((output_function_params, output_step))

    # correctness check against the full-width pure-JAX reference
    ref_x, ref_s = _line_search_reference(x0_f, dir_f, dq_f, cq_f)
    assert x_out_f.shape == (B * E, P) and step_f.shape == (B * E, P)
    assert bool(jnp.all(jnp.isfinite(x_out_f))) and bool(jnp.all(jnp.isfinite(step_f)))
    assert jnp.allclose(x_out_f, ref_x, atol=1e-4, rtol=1e-4)
    assert jnp.allclose(step_f, ref_s, atol=1e-4, rtol=1e-4)

    print("KERNEL_OK")
</pallas_src>

<mosaic_0001>
module attributes {stable_mosaic.version = 11 : i64} {
  func.func @kernel(%arg0: i32, %arg1: memref<16x32xf32, #tpu.memory_space<vmem>>, %arg2: memref<16x32xf32, #tpu.memory_space<vmem>>, %arg3: memref<16x32xf32, #tpu.memory_space<vmem>>, %arg4: memref<16x32xf32, #tpu.memory_space<vmem>>, %arg5: memref<16x32xf32, #tpu.memory_space<vmem>>, %arg6: memref<16x32xf32, #tpu.memory_space<vmem>>) attributes {dimension_semantics = [#tpu.dimension_semantics<parallel>], iteration_bounds = array<i64: 1>, scalar_prefetch = 0 : i64, scratch_operands = 0 : i64, tpu.core_type = #tpu.core_type<tc>, window_params = [{transform_indices = @transform_0, window_bounds = array<i64: 16, 32>}, {transform_indices = @transform_1, window_bounds = array<i64: 16, 32>}, {transform_indices = @transform_2, window_bounds = array<i64: 16, 32>}, {transform_indices = @transform_3, window_bounds = array<i64: 16, 32>}, {transform_indices = @transform_4, window_bounds = array<i64: 16, 32>}, {transform_indices = @transform_5, window_bounds = array<i64: 16, 32>}]} {
    %0 = tpu.iota {dimensions = array<i32: 0>} : vector<128x128xi32>
    %1 = tpu.iota {dimensions = array<i32: 1>} : vector<128x128xi32>
    %2 = arith.cmpi eq, %0, %1 : vector<128x128xi32>
    %3 = arith.extui %2 : vector<128x128xi1> to vector<128x128xi32>
    %4 = arith.sitofp %3 : vector<128x128xi32> to vector<128x128xf32>
    %c0 = arith.constant 0 : index
    %c0_0 = arith.constant 0 : index
    %5 = vector.load %arg2[%c0, %c0_0] : memref<16x32xf32, #tpu.memory_space<vmem>>, vector<16x32xf32>
    %c0_1 = arith.constant 0 : index
    %c0_2 = arith.constant 0 : index
    %6 = vector.load %arg3[%c0_1, %c0_2] : memref<16x32xf32, #tpu.memory_space<vmem>>, vector<16x32xf32>
    %7 = arith.mulf %6, %5 : vector<16x32xf32>
    %c0_3 = arith.constant 0 : index
    %c0_4 = arith.constant 0 : index
    %8 = vector.load %arg1[%c0_3, %c0_4] : memref<16x32xf32, #tpu.memory_space<vmem>>, vector<16x32xf32>
    %c0_5 = arith.constant 0 : index
    %c0_6 = arith.constant 0 : index
    %9 = vector.load %arg4[%c0_5, %c0_6] : memref<16x32xf32, #tpu.memory_space<vmem>>, vector<16x32xf32>
    %10 = arith.subf %8, %9 : vector<16x32xf32>
    %11 = arith.mulf %7, %10 : vector<16x32xf32>
    %cst = arith.constant dense<0.000000e+00> : vector<16xf32>
    %12 = vector.multi_reduction <add>, %11, %cst [1] : vector<16x32xf32> to vector<16xf32>
    %13 = vector.shape_cast %12 : vector<16xf32> to vector<16x1xf32>
    %14 = arith.mulf %7, %5 : vector<16x32xf32>
    %cst_7 = arith.constant dense<0.000000e+00> : vector<16xf32>
    %15 = vector.multi_reduction <add>, %14, %cst_7 [1] : vector<16x32xf32> to vector<16xf32>
    %16 = vector.shape_cast %15 : vector<16xf32> to vector<16x1xf32>
    %c16_i32 = arith.constant 16 : i32
    %17 = arith.muli %arg0, %c16_i32 : i32
    %c16_i32_8 = arith.constant 16 : i32
    %18 = arith.subi %c16_i32_8, %17 : i32
    %19 = tpu.iota {dimensions = array<i32: 0>} : vector<16x1xi32>
    %20 = vector.broadcast %18 : i32 to vector<16x1xi32>
    %21 = arith.cmpi slt, %19, %20 : vector<16x1xi32>
    %cst_9 = arith.constant 0.000000e+00 : f32
    %22 = vector.broadcast %cst_9 : f32 to vector<16x1xf32>
    %23 = arith.select %21, %13, %22 : vector<16x1xi1>, vector<16x1xf32>
    %cst_10 = arith.constant 0.000000e+00 : f32
    %24 = vector.broadcast %cst_10 : f32 to vector<16x1xf32>
    %25 = arith.select %21, %16, %24 : vector<16x1xi1>, vector<16x1xf32>
    %26 = vector.extract_strided_slice %4 {offsets = [0, 0], sizes = [16, 128], strides = [1, 1]} : vector<128x128xf32> to vector<16x128xf32>
    %27 = vector.broadcast %23 : vector<16x1xf32> to vector<16x128xf32>
    %28 = arith.mulf %27, %26 : vector<16x128xf32>
    %cst_11 = arith.constant dense<0.000000e+00> : vector<128xf32>
    %29 = vector.multi_reduction <add>, %28, %cst_11 [0] : vector<16x128xf32> to vector<128xf32>
    %30 = vector.shape_cast %29 : vector<128xf32> to vector<1x128xf32>
    %31 = vector.broadcast %25 : vector<16x1xf32> to vector<16x128xf32>
    %32 = arith.mulf %31, %26 : vector<16x128xf32>
    %cst_12 = arith.constant dense<0.000000e+00> : vector<128xf32>
    %33 = vector.multi_reduction <add>, %32, %cst_12 [0] : vector<16x128xf32> to vector<128xf32>
    %34 = vector.shape_cast %33 : vector<128xf32> to vector<1x128xf32>
    %cst_13 = arith.constant 0.000000e+00 : f32
    %35 = vector.broadcast %cst_13 : f32 to vector<1x128xf32>
    %cst_14 = arith.constant 0.176776692 : f32
    %36 = vector.broadcast %cst_14 : f32 to vector<1x128xf32>
    %37 = arith.mulf %36, %30 : vector<1x128xf32>
    %cst_15 = arith.constant 1.000000e+00 : f32
    %38 = vector.broadcast %cst_15 : f32 to vector<1x128xf32>
    %true = arith.constant true
    %39 = vector.broadcast %true : i1 to vector<1x128xi1>
    %false = arith.constant false
    %40 = vector.broadcast %false : i1 to vector<1x128xi1>
    %41 = arith.select %39, %38, %35 : vector<1x128xi1>, vector<1x128xf32>
    %42 = arith.mulf %41, %30 : vector<1x128xf32>
    %cst_16 = arith.constant 5.000000e-01 : f32
    %43 = vector.broadcast %cst_16 : f32 to vector<1x128xf32>
    %44 = arith.mulf %43, %41 : vector<1x128xf32>
    %45 = arith.mulf %44, %41 : vector<1x128xf32>
    %46 = arith.mulf %45, %34 : vector<1x128xf32>
    %47 = arith.addf %42, %46 : vector<1x128xf32>
    %cst_17 = arith.constant 0.176776692 : f32
    %48 = vector.broadcast %cst_17 : f32 to vector<1x128xf32>
    %49 = arith.mulf %48, %47 : vector<1x128xf32>
    %cst_18 = arith.constant 9.99999974E-5 : f32
    %50 = vector.broadcast %cst_18 : f32 to vector<1x128xf32>
    %51 = arith.mulf %50, %38 : vector<1x128xf32>
    %52 = arith.mulf %51, %37 : vector<1x128xf32>
    %53 = arith.cmpf ogt, %49, %52 : vector<1x128xf32>
    %54 = arith.andi %39, %53 : vector<1x128xi1>
    %55 = arith.ori %40, %54 : vector<1x128xi1>
    %cst_19 = arith.constant dense<true> : vector<1x128xi1>
    %56 = arith.xori %54, %cst_19 : vector<1x128xi1>
    %57 = arith.andi %39, %56 : vector<1x128xi1>
    %58 = arith.mulf %41, %34 : vector<1x128xf32>
    %59 = arith.addf %30, %58 : vector<1x128xf32>
    %cst_20 = arith.constant 0.176776692 : f32
    %60 = vector.broadcast %cst_20 : f32 to vector<1x128xf32>
    %61 = arith.mulf %60, %59 : vector<1x128xf32>
    %62 = math.absf %61 : vector<1x128xf32>
    %cst_21 = arith.constant -0.899999976 : f32
    %63 = vector.broadcast %cst_21 : f32 to vector<1x128xf32>
    %64 = arith.mulf %63, %37 : vector<1x128xf32>
    %65 = arith.cmpf ole, %62, %64 : vector<1x128xf32>
    %66 = arith.andi %57, %65 : vector<1x128xi1>
    %67 = arith.select %66, %38, %35 : vector<1x128xi1>, vector<1x128xf32>
    %cst_22 = arith.constant dense<true> : vector<1x128xi1>
    %68 = arith.xori %66, %cst_22 : vector<1x128xi1>
    %69 = arith.andi %57, %68 : vector<1x128xi1>
    %cst_23 = arith.constant 0.000000e+00 : f32
    %70 = vector.broadcast %cst_23 : f32 to vector<1x128xf32>
    %71 = arith.cmpf oge, %61, %70 : vector<1x128xf32>
    %72 = arith.andi %69, %71 : vector<1x128xi1>
    %73 = arith.ori %55, %72 : vector<1x128xi1>
    %74 = arith.select %72, %35, %38 : vector<1x128xi1>, vector<1x128xf32>
    %75 = arith.select %72, %38, %35 : vector<1x128xi1>, vector<1x128xf32>
    %76 = arith.select %72, %35, %41 : vector<1x128xi1>, vector<1x128xf32>
    %cst_24 = arith.constant dense<true> : vector<1x128xi1>
    %77 = arith.xori %72, %cst_24 : vector<1x128xi1>
    %78 = arith.andi %69, %77 : vector<1x128xi1>
    %79 = arith.select %78, %74, %75 : vector<1x128xi1>, vector<1x128xf32>
    %cst_25 = arith.constant 2.000000e+00 : f32
    %80 = vector.broadcast %cst_25 : f32 to vector<1x128xf32>
    %81 = arith.mulf %80, %74 : vector<1x128xf32>
    %cst_26 = arith.constant 1.600000e+01 : f32
    %82 = vector.broadcast %cst_26 : f32 to vector<1x128xf32>
    %83 = arith.minimumf %81, %82 : vector<1x128xf32>
    %84 = arith.select %78, %83, %74 : vector<1x128xi1>, vector<1x128xf32>
    %85 = arith.select %78, %84, %76 : vector<1x128xi1>, vector<1x128xf32>
    %86 = arith.mulf %85, %30 : vector<1x128xf32>
    %cst_27 = arith.constant 5.000000e-01 : f32
    %87 = vector.broadcast %cst_27 : f32 to vector<1x128xf32>
    %88 = arith.mulf %87, %85 : vector<1x128xf32>
    %89 = arith.mulf %88, %85 : vector<1x128xf32>
    %90 = arith.mulf %89, %34 : vector<1x128xf32>
    %91 = arith.addf %86, %90 : vector<1x128xf32>
    %cst_28 = arith.constant 0.176776692 : f32
    %92 = vector.broadcast %cst_28 : f32 to vector<1x128xf32>
    %93 = arith.mulf %92, %91 : vector<1x128xf32>
    %cst_29 = arith.constant 9.99999974E-5 : f32
    %94 = vector.broadcast %cst_29 : f32 to vector<1x128xf32>
    %95 = arith.mulf %94, %84 : vector<1x128xf32>
    %96 = arith.mulf %95, %37 : vector<1x128xf32>
    %97 = arith.cmpf ogt, %93, %96 : vector<1x128xf32>
    %98 = arith.cmpf oge, %93, %49 : vector<1x128xf32>
    %99 = arith.ori %97, %98 : vector<1x128xi1>
    %100 = arith.andi %78, %99 : vector<1x128xi1>
    %101 = arith.ori %73, %100 : vector<1x128xi1>
    %cst_30 = arith.constant dense<true> : vector<1x128xi1>
    %102 = arith.xori %100, %cst_30 : vector<1x128xi1>
    %103 = arith.andi %78, %102 : vector<1x128xi1>
    %104 = arith.mulf %85, %34 : vector<1x128xf32>
    %105 = arith.addf %30, %104 : vector<1x128xf32>
    %cst_31 = arith.constant 0.176776692 : f32
    %106 = vector.broadcast %cst_31 : f32 to vector<1x128xf32>
    %107 = arith.mulf %106, %105 : vector<1x128xf32>
    %108 = math.absf %107 : vector<1x128xf32>
    %cst_32 = arith.constant -0.899999976 : f32
    %109 = vector.broadcast %cst_32 : f32 to vector<1x128xf32>
    %110 = arith.mulf %109, %37 : vector<1x128xf32>
    %111 = arith.cmpf ole, %108, %110 : vector<1x128xf32>
    %112 = arith.andi %103, %111 : vector<1x128xi1>
    %113 = arith.select %112, %84, %67 : vector<1x128xi1>, vector<1x128xf32>
    %cst_33 = arith.constant dense<true> : vector<1x128xi1>
    %114 = arith.xori %112, %cst_33 : vector<1x128xi1>
    %115 = arith.andi %103, %114 : vector<1x128xi1>
    %cst_34 = arith.constant 0.000000e+00 : f32
    %116 = vector.broadcast %cst_34 : f32 to vector<1x128xf32>
    %117 = arith.cmpf oge, %107, %116 : vector<1x128xf32>
    %118 = arith.andi %115, %117 : vector<1x128xi1>
    %119 = arith.ori %101, %118 : vector<1x128xi1>
    %120 = arith.select %118, %79, %84 : vector<1x128xi1>, vector<1x128xf32>
    %121 = arith.select %118, %84, %79 : vector<1x128xi1>, vector<1x128xf32>
    %122 = arith.select %118, %79, %85 : vector<1x128xi1>, vector<1x128xf32>
    %cst_35 = arith.constant dense<true> : vector<1x128xi1>
    %123 = arith.xori %118, %cst_35 : vector<1x128xi1>
    %124 = arith.andi %115, %123 : vector<1x128xi1>
    %125 = arith.select %124, %120, %121 : vector<1x128xi1>, vector<1x128xf32>
    %cst_36 = arith.constant 2.000000e+00 : f32
    %126 = vector.broadcast %cst_36 : f32 to vector<1x128xf32>
    %127 = arith.mulf %126, %120 : vector<1x128xf32>
    %cst_37 = arith.constant 1.600000e+01 : f32
    %128 = vector.broadcast %cst_37 : f32 to vector<1x128xf32>
    %129 = arith.minimumf %127, %128 : vector<1x128xf32>
    %130 = arith.select %124, %129, %120 : vector<1x128xi1>, vector<1x128xf32>
    %131 = arith.select %124, %130, %122 : vector<1x128xi1>, vector<1x128xf32>
    %132 = arith.mulf %131, %30 : vector<1x128xf32>
    %cst_38 = arith.constant 5.000000e-01 : f32
    %133 = vector.broadcast %cst_38 : f32 to vector<1x128xf32>
    %134 = arith.mulf %133, %131 : vector<1x128xf32>
    %135 = arith.mulf %134, %131 : vector<1x128xf32>
    %136 = arith.mulf %135, %34 : vector<1x128xf32>
    %137 = arith.addf %132, %136 : vector<1x128xf32>
    %cst_39 = arith.constant 0.176776692 : f32
    %138 = vector.broadcast %cst_39 : f32 to vector<1x128xf32>
    %139 = arith.mulf %138, %137 : vector<1x128xf32>
    %cst_40 = arith.constant 9.99999974E-5 : f32
    %140 = vector.broadcast %cst_40 : f32 to vector<1x128xf32>
    %141 = arith.mulf %140, %130 : vector<1x128xf32>
    %142 = arith.mulf %141, %37 : vector<1x128xf32>
    %143 = arith.cmpf ogt, %139, %142 : vector<1x128xf32>
    %144 = arith.cmpf oge, %139, %93 : vector<1x128xf32>
    %145 = arith.ori %143, %144 : vector<1x128xi1>
    %146 = arith.andi %124, %145 : vector<1x128xi1>
    %147 = arith.ori %119, %146 : vector<1x128xi1>
    %cst_41 = arith.constant dense<true> : vector<1x128xi1>
    %148 = arith.xori %146, %cst_41 : vector<1x128xi1>
    %149 = arith.andi %124, %148 : vector<1x128xi1>
    %150 = arith.mulf %131, %34 : vector<1x128xf32>
    %151 = arith.addf %30, %150 : vector<1x128xf32>
    %cst_42 = arith.constant 0.176776692 : f32
    %152 = vector.broadcast %cst_42 : f32 to vector<1x128xf32>
    %153 = arith.mulf %152, %151 : vector<1x128xf32>
    %154 = math.absf %153 : vector<1x128xf32>
    %cst_43 = arith.constant -0.899999976 : f32
    %155 = vector.broadcast %cst_43 : f32 to vector<1x128xf32>
    %156 = arith.mulf %155, %37 : vector<1x128xf32>
    %157 = arith.cmpf ole, %154, %156 : vector<1x128xf32>
    %158 = arith.andi %149, %157 : vector<1x128xi1>
    %159 = arith.select %158, %130, %113 : vector<1x128xi1>, vector<1x128xf32>
    %cst_44 = arith.constant dense<true> : vector<1x128xi1>
    %160 = arith.xori %158, %cst_44 : vector<1x128xi1>
    %161 = arith.andi %149, %160 : vector<1x128xi1>
    %cst_45 = arith.constant 0.000000e+00 : f32
    %162 = vector.broadcast %cst_45 : f32 to vector<1x128xf32>
    %163 = arith.cmpf oge, %153, %162 : vector<1x128xf32>
    %164 = arith.andi %161, %163 : vector<1x128xi1>
    %165 = arith.ori %147, %164 : vector<1x128xi1>
    %166 = arith.select %164, %125, %130 : vector<1x128xi1>, vector<1x128xf32>
    %167 = arith.select %164, %130, %125 : vector<1x128xi1>, vector<1x128xf32>
    %168 = arith.select %164, %125, %131 : vector<1x128xi1>, vector<1x128xf32>
    %cst_46 = arith.constant dense<true> : vector<1x128xi1>
    %169 = arith.xori %164, %cst_46 : vector<1x128xi1>
    %170 = arith.andi %161, %169 : vector<1x128xi1>
    %171 = arith.select %170, %166, %167 : vector<1x128xi1>, vector<1x128xf32>
    %cst_47 = arith.constant 2.000000e+00 : f32
    %172 = vector.broadcast %cst_47 : f32 to vector<1x128xf32>
    %173 = arith.mulf %172, %166 : vector<1x128xf32>
    %cst_48 = arith.constant 1.600000e+01 : f32
    %174 = vector.broadcast %cst_48 : f32 to vector<1x128xf32>
    %175 = arith.minimumf %173, %174 : vector<1x128xf32>
    %176 = arith.select %170, %175, %166 : vector<1x128xi1>, vector<1x128xf32>
    %177 = arith.select %170, %176, %168 : vector<1x128xi1>, vector<1x128xf32>
    %178 = arith.mulf %177, %30 : vector<1x128xf32>
    %cst_49 = arith.constant 5.000000e-01 : f32
    %179 = vector.broadcast %cst_49 : f32 to vector<1x128xf32>
    %180 = arith.mulf %179, %177 : vector<1x128xf32>
    %181 = arith.mulf %180, %177 : vector<1x128xf32>
    %182 = arith.mulf %181, %34 : vector<1x128xf32>
    %183 = arith.addf %178, %182 : vector<1x128xf32>
    %cst_50 = arith.constant 0.176776692 : f32
    %184 = vector.broadcast %cst_50 : f32 to vector<1x128xf32>
    %185 = arith.mulf %184, %183 : vector<1x128xf32>
    %cst_51 = arith.constant 9.99999974E-5 : f32
    %186 = vector.broadcast %cst_51 : f32 to vector<1x128xf32>
    %187 = arith.mulf %186, %176 : vector<1x128xf32>
    %188 = arith.mulf %187, %37 : vector<1x128xf32>
    %189 = arith.cmpf ogt, %185, %188 : vector<1x128xf32>
    %190 = arith.cmpf oge, %185, %139 : vector<1x128xf32>
    %191 = arith.ori %189, %190 : vector<1x128xi1>
    %192 = arith.andi %170, %191 : vector<1x128xi1>
    %193 = arith.ori %165, %192 : vector<1x128xi1>
    %cst_52 = arith.constant dense<true> : vector<1x128xi1>
    %194 = arith.xori %192, %cst_52 : vector<1x128xi1>
    %195 = arith.andi %170, %194 : vector<1x128xi1>
    %196 = arith.mulf %177, %34 : vector<1x128xf32>
    %197 = arith.addf %30, %196 : vector<1x128xf32>
    %cst_53 = arith.constant 0.176776692 : f32
    %198 = vector.broadcast %cst_53 : f32 to vector<1x128xf32>
    %199 = arith.mulf %198, %197 : vector<1x128xf32>
    %200 = math.absf %199 : vector<1x128xf32>
    %cst_54 = arith.constant -0.899999976 : f32
    %201 = vector.broadcast %cst_54 : f32 to vector<1x128xf32>
    %202 = arith.mulf %201, %37 : vector<1x128xf32>
    %203 = arith.cmpf ole, %200, %202 : vector<1x128xf32>
    %204 = arith.andi %195, %203 : vector<1x128xi1>
    %205 = arith.select %204, %176, %159 : vector<1x128xi1>, vector<1x128xf32>
    %cst_55 = arith.constant dense<true> : vector<1x128xi1>
    %206 = arith.xori %204, %cst_55 : vector<1x128xi1>
    %207 = arith.andi %195, %206 : vector<1x128xi1>
    %cst_56 = arith.constant 0.000000e+00 : f32
    %208 = vector.broadcast %cst_56 : f32 to vector<1x128xf32>
    %209 = arith.cmpf oge, %199, %208 : vector<1x128xf32>
    %210 = arith.andi %207, %209 : vector<1x128xi1>
    %211 = arith.ori %193, %210 : vector<1x128xi1>
    %212 = arith.select %210, %171, %176 : vector<1x128xi1>, vector<1x128xf32>
    %213 = arith.select %210, %176, %171 : vector<1x128xi1>, vector<1x128xf32>
    %214 = arith.select %210, %171, %177 : vector<1x128xi1>, vector<1x128xf32>
    %cst_57 = arith.constant dense<true> : vector<1x128xi1>
    %215 = arith.xori %210, %cst_57 : vector<1x128xi1>
    %216 = arith.andi %207, %215 : vector<1x128xi1>
    %217 = arith.select %216, %212, %213 : vector<1x128xi1>, vector<1x128xf32>
    %cst_58 = arith.constant 2.000000e+00 : f32
    %218 = vector.broadcast %cst_58 : f32 to vector<1x128xf32>
    %219 = arith.mulf %218, %212 : vector<1x128xf32>
    %cst_59 = arith.constant 1.600000e+01 : f32
    %220 = vector.broadcast %cst_59 : f32 to vector<1x128xf32>
    %221 = arith.minimumf %219, %220 : vector<1x128xf32>
    %222 = arith.select %216, %221, %212 : vector<1x128xi1>, vector<1x128xf32>
    %223 = arith.mulf %217, %34 : vector<1x128xf32>
    %224 = arith.addf %30, %223 : vector<1x128xf32>
    %cst_60 = arith.constant 0.176776692 : f32
    %225 = vector.broadcast %cst_60 : f32 to vector<1x128xf32>
    %226 = arith.mulf %225, %224 : vector<1x128xf32>
    %227 = arith.mulf %222, %34 : vector<1x128xf32>
    %228 = arith.addf %30, %227 : vector<1x128xf32>
    %cst_61 = arith.constant 0.176776692 : f32
    %229 = vector.broadcast %cst_61 : f32 to vector<1x128xf32>
    %230 = arith.mulf %229, %228 : vector<1x128xf32>
    %231 = arith.subf %230, %226 : vector<1x128xf32>
    %232 = math.absf %231 : vector<1x128xf32>
    %cst_62 = arith.constant 9.99999996E-13 : f32
    %233 = vector.broadcast %cst_62 : f32 to vector<1x128xf32>
    %234 = arith.cmpf ogt, %232, %233 : vector<1x128xf32>
    %235 = arith.subf %222, %217 : vector<1x128xf32>
    %236 = arith.mulf %230, %235 : vector<1x128xf32>
    %cst_63 = arith.constant 1.000000e+00 : f32
    %237 = vector.broadcast %cst_63 : f32 to vector<1x128xf32>
    %238 = arith.select %234, %231, %237 : vector<1x128xi1>, vector<1x128xf32>
    %239 = arith.divf %236, %238 : vector<1x128xf32>
    %240 = arith.subf %222, %239 : vector<1x128xf32>
    %241 = arith.addf %217, %222 : vector<1x128xf32>
    %cst_64 = arith.constant 5.000000e-01 : f32
    %242 = vector.broadcast %cst_64 : f32 to vector<1x128xf32>
    %243 = arith.mulf %242, %241 : vector<1x128xf32>
    %244 = arith.select %234, %240, %243 : vector<1x128xi1>, vector<1x128xf32>
    %245 = arith.minimumf %217, %222 : vector<1x128xf32>
    %246 = arith.maximumf %217, %222 : vector<1x128xf32>
    %247 = arith.maximumf %245, %244 : vector<1x128xf32>
    %248 = arith.minimumf %246, %247 : vector<1x128xf32>
    %cst_65 = arith.constant 0.000000e+00 : f32
    %249 = vector.broadcast %cst_65 : f32 to vector<1x128xf32>
    %250 = arith.select %211, %248, %249 : vector<1x128xi1>, vector<1x128xf32>
    %251 = arith.mulf %217, %30 : vector<1x128xf32>
    %cst_66 = arith.constant 5.000000e-01 : f32
    %252 = vector.broadcast %cst_66 : f32 to vector<1x128xf32>
    %253 = arith.mulf %252, %217 : vector<1x128xf32>
    %254 = arith.mulf %253, %217 : vector<1x128xf32>
    %255 = arith.mulf %254, %34 : vector<1x128xf32>
    %256 = arith.addf %251, %255 : vector<1x128xf32>
    %cst_67 = arith.constant 0.176776692 : f32
    %257 = vector.broadcast %cst_67 : f32 to vector<1x128xf32>
    %258 = arith.mulf %257, %256 : vector<1x128xf32>
    %259 = arith.mulf %250, %30 : vector<1x128xf32>
    %cst_68 = arith.constant 5.000000e-01 : f32
    %260 = vector.broadcast %cst_68 : f32 to vector<1x128xf32>
    %261 = arith.mulf %260, %250 : vector<1x128xf32>
    %262 = arith.mulf %261, %250 : vector<1x128xf32>
    %263 = arith.mulf %262, %34 : vector<1x128xf32>
    %264 = arith.addf %259, %263 : vector<1x128xf32>
    %cst_69 = arith.constant 0.176776692 : f32
    %265 = vector.broadcast %cst_69 : f32 to vector<1x128xf32>
    %266 = arith.mulf %265, %264 : vector<1x128xf32>
    %cst_70 = arith.constant 9.99999974E-5 : f32
    %267 = vector.broadcast %cst_70 : f32 to vector<1x128xf32>
    %268 = arith.mulf %267, %250 : vector<1x128xf32>
    %269 = arith.mulf %268, %37 : vector<1x128xf32>
    %270 = arith.cmpf ogt, %266, %269 : vector<1x128xf32>
    %271 = arith.andi %211, %270 : vector<1x128xi1>
    %272 = arith.cmpf oge, %266, %258 : vector<1x128xf32>
    %273 = arith.ori %272, %271 : vector<1x128xi1>
    %274 = arith.andi %211, %273 : vector<1x128xi1>
    %275 = arith.select %274, %250, %222 : vector<1x128xi1>, vector<1x128xf32>
    %276 = arith.select %274, %250, %214 : vector<1x128xi1>, vector<1x128xf32>
    %cst_71 = arith.constant dense<true> : vector<1x128xi1>
    %277 = arith.xori %274, %cst_71 : vector<1x128xi1>
    %278 = arith.andi %211, %277 : vector<1x128xi1>
    %279 = arith.mulf %250, %34 : vector<1x128xf32>
    %280 = arith.addf %30, %279 : vector<1x128xf32>
    %cst_72 = arith.constant 0.176776692 : f32
    %281 = vector.broadcast %cst_72 : f32 to vector<1x128xf32>
    %282 = arith.mulf %281, %280 : vector<1x128xf32>
    %283 = math.absf %282 : vector<1x128xf32>
    %cst_73 = arith.constant -0.899999976 : f32
    %284 = vector.broadcast %cst_73 : f32 to vector<1x128xf32>
    %285 = arith.mulf %284, %37 : vector<1x128xf32>
    %286 = arith.cmpf ole, %283, %285 : vector<1x128xf32>
    %287 = arith.andi %278, %286 : vector<1x128xi1>
    %288 = arith.select %287, %250, %205 : vector<1x128xi1>, vector<1x128xf32>
    %cst_74 = arith.constant dense<true> : vector<1x128xi1>
    %289 = arith.xori %287, %cst_74 : vector<1x128xi1>
    %290 = arith.andi %211, %289 : vector<1x128xi1>
    %291 = arith.subf %275, %217 : vector<1x128xf32>
    %292 = arith.mulf %282, %291 : vector<1x128xf32>
    %cst_75 = arith.constant 0.000000e+00 : f32
    %293 = vector.broadcast %cst_75 : f32 to vector<1x128xf32>
    %294 = arith.cmpf oge, %292, %293 : vector<1x128xf32>
    %295 = arith.andi %294, %290 : vector<1x128xi1>
    %296 = arith.andi %278, %295 : vector<1x128xi1>
    %297 = arith.select %296, %217, %275 : vector<1x128xi1>, vector<1x128xf32>
    %298 = arith.select %296, %217, %276 : vector<1x128xi1>, vector<1x128xf32>
    %299 = arith.andi %278, %290 : vector<1x128xi1>
    %300 = arith.select %299, %250, %217 : vector<1x128xi1>, vector<1x128xf32>
    %301 = arith.mulf %300, %34 : vector<1x128xf32>
    %302 = arith.addf %30, %301 : vector<1x128xf32>
    %cst_76 = arith.constant 0.176776692 : f32
    %303 = vector.broadcast %cst_76 : f32 to vector<1x128xf32>
    %304 = arith.mulf %303, %302 : vector<1x128xf32>
    %305 = arith.mulf %297, %34 : vector<1x128xf32>
    %306 = arith.addf %30, %305 : vector<1x128xf32>
    %cst_77 = arith.constant 0.176776692 : f32
    %307 = vector.broadcast %cst_77 : f32 to vector<1x128xf32>
    %308 = arith.mulf %307, %306 : vector<1x128xf32>
    %309 = arith.subf %308, %304 : vector<1x128xf32>
    %310 = math.absf %309 : vector<1x128xf32>
    %cst_78 = arith.constant 9.99999996E-13 : f32
    %311 = vector.broadcast %cst_78 : f32 to vector<1x128xf32>
    %312 = arith.cmpf ogt, %310, %311 : vector<1x128xf32>
    %313 = arith.subf %297, %300 : vector<1x128xf32>
    %314 = arith.mulf %308, %313 : vector<1x128xf32>
    %cst_79 = arith.constant 1.000000e+00 : f32
    %315 = vector.broadcast %cst_79 : f32 to vector<1x128xf32>
    %316 = arith.select %312, %309, %315 : vector<1x128xi1>, vector<1x128xf32>
    %317 = arith.divf %314, %316 : vector<1x128xf32>
    %318 = arith.subf %297, %317 : vector<1x128xf32>
    %319 = arith.addf %300, %297 : vector<1x128xf32>
    %cst_80 = arith.constant 5.000000e-01 : f32
    %320 = vector.broadcast %cst_80 : f32 to vector<1x128xf32>
    %321 = arith.mulf %320, %319 : vector<1x128xf32>
    %322 = arith.select %312, %318, %321 : vector<1x128xi1>, vector<1x128xf32>
    %323 = arith.minimumf %300, %297 : vector<1x128xf32>
    %324 = arith.maximumf %300, %297 : vector<1x128xf32>
    %325 = arith.maximumf %323, %322 : vector<1x128xf32>
    %326 = arith.minimumf %324, %325 : vector<1x128xf32>
    %cst_81 = arith.constant 0.000000e+00 : f32
    %327 = vector.broadcast %cst_81 : f32 to vector<1x128xf32>
    %328 = arith.select %290, %326, %327 : vector<1x128xi1>, vector<1x128xf32>
    %329 = arith.mulf %300, %30 : vector<1x128xf32>
    %cst_82 = arith.constant 5.000000e-01 : f32
    %330 = vector.broadcast %cst_82 : f32 to vector<1x128xf32>
    %331 = arith.mulf %330, %300 : vector<1x128xf32>
    %332 = arith.mulf %331, %300 : vector<1x128xf32>
    %333 = arith.mulf %332, %34 : vector<1x128xf32>
    %334 = arith.addf %329, %333 : vector<1x128xf32>
    %cst_83 = arith.constant 0.176776692 : f32
    %335 = vector.broadcast %cst_83 : f32 to vector<1x128xf32>
    %336 = arith.mulf %335, %334 : vector<1x128xf32>
    %337 = arith.mulf %328, %30 : vector<1x128xf32>
    %cst_84 = arith.constant 5.000000e-01 : f32
    %338 = vector.broadcast %cst_84 : f32 to vector<1x128xf32>
    %339 = arith.mulf %338, %328 : vector<1x128xf32>
    %340 = arith.mulf %339, %328 : vector<1x128xf32>
    %341 = arith.mulf %340, %34 : vector<1x128xf32>
    %342 = arith.addf %337, %341 : vector<1x128xf32>
    %cst_85 = arith.constant 0.176776692 : f32
    %343 = vector.broadcast %cst_85 : f32 to vector<1x128xf32>
    %344 = arith.mulf %343, %342 : vector<1x128xf32>
    %cst_86 = arith.constant 9.99999974E-5 : f32
    %345 = vector.broadcast %cst_86 : f32 to vector<1x128xf32>
    %346 = arith.mulf %345, %328 : vector<1x128xf32>
    %347 = arith.mulf %346, %37 : vector<1x128xf32>
    %348 = arith.cmpf ogt, %344, %347 : vector<1x128xf32>
    %349 = arith.andi %290, %348 : vector<1x128xi1>
    %350 = arith.cmpf oge, %344, %336 : vector<1x128xf32>
    %351 = arith.ori %350, %349 : vector<1x128xi1>
    %352 = arith.andi %290, %351 : vector<1x128xi1>
    %353 = arith.select %352, %328, %297 : vector<1x128xi1>, vector<1x128xf32>
    %354 = arith.select %352, %328, %298 : vector<1x128xi1>, vector<1x128xf32>
    %cst_87 = arith.constant dense<true> : vector<1x128xi1>
    %355 = arith.xori %352, %cst_87 : vector<1x128xi1>
    %356 = arith.andi %290, %355 : vector<1x128xi1>
    %357 = arith.mulf %328, %34 : vector<1x128xf32>
    %358 = arith.addf %30, %357 : vector<1x128xf32>
    %cst_88 = arith.constant 0.176776692 : f32
    %359 = vector.broadcast %cst_88 : f32 to vector<1x128xf32>
    %360 = arith.mulf %359, %358 : vector<1x128xf32>
    %361 = math.absf %360 : vector<1x128xf32>
    %cst_89 = arith.constant -0.899999976 : f32
    %362 = vector.broadcast %cst_89 : f32 to vector<1x128xf32>
    %363 = arith.mulf %362, %37 : vector<1x128xf32>
    %364 = arith.cmpf ole, %361, %363 : vector<1x128xf32>
    %365 = arith.andi %356, %364 : vector<1x128xi1>
    %366 = arith.select %365, %328, %288 : vector<1x128xi1>, vector<1x128xf32>
    %cst_90 = arith.constant dense<true> : vector<1x128xi1>
    %367 = arith.xori %365, %cst_90 : vector<1x128xi1>
    %368 = arith.andi %290, %367 : vector<1x128xi1>
    %369 = arith.subf %353, %300 : vector<1x128xf32>
    %370 = arith.mulf %360, %369 : vector<1x128xf32>
    %cst_91 = arith.constant 0.000000e+00 : f32
    %371 = vector.broadcast %cst_91 : f32 to vector<1x128xf32>
    %372 = arith.cmpf oge, %370, %371 : vector<1x128xf32>
    %373 = arith.andi %372, %368 : vector<1x128xi1>
    %374 = arith.andi %356, %373 : vector<1x128xi1>
    %375 = arith.select %374, %300, %353 : vector<1x128xi1>, vector<1x128xf32>
    %376 = arith.select %374, %300, %354 : vector<1x128xi1>, vector<1x128xf32>
    %377 = arith.andi %356, %368 : vector<1x128xi1>
    %378 = arith.select %377, %328, %300 : vector<1x128xi1>, vector<1x128xf32>
    %379 = arith.mulf %378, %34 : vector<1x128xf32>
    %380 = arith.addf %30, %379 : vector<1x128xf32>
    %cst_92 = arith.constant 0.176776692 : f32
    %381 = vector.broadcast %cst_92 : f32 to vector<1x128xf32>
    %382 = arith.mulf %381, %380 : vector<1x128xf32>
    %383 = arith.mulf %375, %34 : vector<1x128xf32>
    %384 = arith.addf %30, %383 : vector<1x128xf32>
    %cst_93 = arith.constant 0.176776692 : f32
    %385 = vector.broadcast %cst_93 : f32 to vector<1x128xf32>
    %386 = arith.mulf %385, %384 : vector<1x128xf32>
    %387 = arith.subf %386, %382 : vector<1x128xf32>
    %388 = math.absf %387 : vector<1x128xf32>
    %cst_94 = arith.constant 9.99999996E-13 : f32
    %389 = vector.broadcast %cst_94 : f32 to vector<1x128xf32>
    %390 = arith.cmpf ogt, %388, %389 : vector<1x128xf32>
    %391 = arith.subf %375, %378 : vector<1x128xf32>
    %392 = arith.mulf %386, %391 : vector<1x128xf32>
    %cst_95 = arith.constant 1.000000e+00 : f32
    %393 = vector.broadcast %cst_95 : f32 to vector<1x128xf32>
    %394 = arith.select %390, %387, %393 : vector<1x128xi1>, vector<1x128xf32>
    %395 = arith.divf %392, %394 : vector<1x128xf32>
    %396 = arith.subf %375, %395 : vector<1x128xf32>
    %397 = arith.addf %378, %375 : vector<1x128xf32>
    %cst_96 = arith.constant 5.000000e-01 : f32
    %398 = vector.broadcast %cst_96 : f32 to vector<1x128xf32>
    %399 = arith.mulf %398, %397 : vector<1x128xf32>
    %400 = arith.select %390, %396, %399 : vector<1x128xi1>, vector<1x128xf32>
    %401 = arith.minimumf %378, %375 : vector<1x128xf32>
    %402 = arith.maximumf %378, %375 : vector<1x128xf32>
    %403 = arith.maximumf %401, %400 : vector<1x128xf32>
    %404 = arith.minimumf %402, %403 : vector<1x128xf32>
    %cst_97 = arith.constant 0.000000e+00 : f32
    %405 = vector.broadcast %cst_97 : f32 to vector<1x128xf32>
    %406 = arith.select %368, %404, %405 : vector<1x128xi1>, vector<1x128xf32>
    %407 = arith.mulf %378, %30 : vector<1x128xf32>
    %cst_98 = arith.constant 5.000000e-01 : f32
    %408 = vector.broadcast %cst_98 : f32 to vector<1x128xf32>
    %409 = arith.mulf %408, %378 : vector<1x128xf32>
    %410 = arith.mulf %409, %378 : vector<1x128xf32>
    %411 = arith.mulf %410, %34 : vector<1x128xf32>
    %412 = arith.addf %407, %411 : vector<1x128xf32>
    %cst_99 = arith.constant 0.176776692 : f32
    %413 = vector.broadcast %cst_99 : f32 to vector<1x128xf32>
    %414 = arith.mulf %413, %412 : vector<1x128xf32>
    %415 = arith.mulf %406, %30 : vector<1x128xf32>
    %cst_100 = arith.constant 5.000000e-01 : f32
    %416 = vector.broadcast %cst_100 : f32 to vector<1x128xf32>
    %417 = arith.mulf %416, %406 : vector<1x128xf32>
    %418 = arith.mulf %417, %406 : vector<1x128xf32>
    %419 = arith.mulf %418, %34 : vector<1x128xf32>
    %420 = arith.addf %415, %419 : vector<1x128xf32>
    %cst_101 = arith.constant 0.176776692 : f32
    %421 = vector.broadcast %cst_101 : f32 to vector<1x128xf32>
    %422 = arith.mulf %421, %420 : vector<1x128xf32>
    %cst_102 = arith.constant 9.99999974E-5 : f32
    %423 = vector.broadcast %cst_102 : f32 to vector<1x128xf32>
    %424 = arith.mulf %423, %406 : vector<1x128xf32>
    %425 = arith.mulf %424, %37 : vector<1x128xf32>
    %426 = arith.cmpf ogt, %422, %425 : vector<1x128xf32>
    %427 = arith.andi %368, %426 : vector<1x128xi1>
    %428 = arith.cmpf oge, %422, %414 : vector<1x128xf32>
    %429 = arith.ori %428, %427 : vector<1x128xi1>
    %430 = arith.andi %368, %429 : vector<1x128xi1>
    %431 = arith.select %430, %406, %375 : vector<1x128xi1>, vector<1x128xf32>
    %432 = arith.select %430, %406, %376 : vector<1x128xi1>, vector<1x128xf32>
    %cst_103 = arith.constant dense<true> : vector<1x128xi1>
    %433 = arith.xori %430, %cst_103 : vector<1x128xi1>
    %434 = arith.andi %368, %433 : vector<1x128xi1>
    %435 = arith.mulf %406, %34 : vector<1x128xf32>
    %436 = arith.addf %30, %435 : vector<1x128xf32>
    %cst_104 = arith.constant 0.176776692 : f32
    %437 = vector.broadcast %cst_104 : f32 to vector<1x128xf32>
    %438 = arith.mulf %437, %436 : vector<1x128xf32>
    %439 = math.absf %438 : vector<1x128xf32>
    %cst_105 = arith.constant -0.899999976 : f32
    %440 = vector.broadcast %cst_105 : f32 to vector<1x128xf32>
    %441 = arith.mulf %440, %37 : vector<1x128xf32>
    %442 = arith.cmpf ole, %439, %441 : vector<1x128xf32>
    %443 = arith.andi %434, %442 : vector<1x128xi1>
    %444 = arith.select %443, %406, %366 : vector<1x128xi1>, vector<1x128xf32>
    %cst_106 = arith.constant dense<true> : vector<1x128xi1>
    %445 = arith.xori %443, %cst_106 : vector<1x128xi1>
    %446 = arith.andi %368, %445 : vector<1x128xi1>
    %447 = arith.subf %431, %378 : vector<1x128xf32>
    %448 = arith.mulf %438, %447 : vector<1x128xf32>
    %cst_107 = arith.constant 0.000000e+00 : f32
    %449 = vector.broadcast %cst_107 : f32 to vector<1x128xf32>
    %450 = arith.cmpf oge, %448, %449 : vector<1x128xf32>
    %451 = arith.andi %450, %446 : vector<1x128xi1>
    %452 = arith.andi %434, %451 : vector<1x128xi1>
    %453 = arith.select %452, %378, %431 : vector<1x128xi1>, vector<1x128xf32>
    %454 = arith.select %452, %378, %432 : vector<1x128xi1>, vector<1x128xf32>
    %455 = arith.andi %434, %446 : vector<1x128xi1>
    %456 = arith.select %455, %406, %378 : vector<1x128xi1>, vector<1x128xf32>
    %457 = arith.mulf %456, %34 : vector<1x128xf32>
    %458 = arith.addf %30, %457 : vector<1x128xf32>
    %cst_108 = arith.constant 0.176776692 : f32
    %459 = vector.broadcast %cst_108 : f32 to vector<1x128xf32>
    %460 = arith.mulf %459, %458 : vector<1x128xf32>
    %461 = arith.mulf %453, %34 : vector<1x128xf32>
    %462 = arith.addf %30, %461 : vector<1x128xf32>
    %cst_109 = arith.constant 0.176776692 : f32
    %463 = vector.broadcast %cst_109 : f32 to vector<1x128xf32>
    %464 = arith.mulf %463, %462 : vector<1x128xf32>
    %465 = arith.subf %464, %460 : vector<1x128xf32>
    %466 = math.absf %465 : vector<1x128xf32>
    %cst_110 = arith.constant 9.99999996E-13 : f32
    %467 = vector.broadcast %cst_110 : f32 to vector<1x128xf32>
    %468 = arith.cmpf ogt, %466, %467 : vector<1x128xf32>
    %469 = arith.subf %453, %456 : vector<1x128xf32>
    %470 = arith.mulf %464, %469 : vector<1x128xf32>
    %cst_111 = arith.constant 1.000000e+00 : f32
    %471 = vector.broadcast %cst_111 : f32 to vector<1x128xf32>
    %472 = arith.select %468, %465, %471 : vector<1x128xi1>, vector<1x128xf32>
    %473 = arith.divf %470, %472 : vector<1x128xf32>
    %474 = arith.subf %453, %473 : vector<1x128xf32>
    %475 = arith.addf %456, %453 : vector<1x128xf32>
    %cst_112 = arith.constant 5.000000e-01 : f32
    %476 = vector.broadcast %cst_112 : f32 to vector<1x128xf32>
    %477 = arith.mulf %476, %475 : vector<1x128xf32>
    %478 = arith.select %468, %474, %477 : vector<1x128xi1>, vector<1x128xf32>
    %479 = arith.minimumf %456, %453 : vector<1x128xf32>
    %480 = arith.maximumf %456, %453 : vector<1x128xf32>
    %481 = arith.maximumf %479, %478 : vector<1x128xf32>
    %482 = arith.minimumf %480, %481 : vector<1x128xf32>
    %cst_113 = arith.constant 0.000000e+00 : f32
    %483 = vector.broadcast %cst_113 : f32 to vector<1x128xf32>
    %484 = arith.select %446, %482, %483 : vector<1x128xi1>, vector<1x128xf32>
    %485 = arith.mulf %456, %30 : vector<1x128xf32>
    %cst_114 = arith.constant 5.000000e-01 : f32
    %486 = vector.broadcast %cst_114 : f32 to vector<1x128xf32>
    %487 = arith.mulf %486, %456 : vector<1x128xf32>
    %488 = arith.mulf %487, %456 : vector<1x128xf32>
    %489 = arith.mulf %488, %34 : vector<1x128xf32>
    %490 = arith.addf %485, %489 : vector<1x128xf32>
    %cst_115 = arith.constant 0.176776692 : f32
    %491 = vector.broadcast %cst_115 : f32 to vector<1x128xf32>
    %492 = arith.mulf %491, %490 : vector<1x128xf32>
    %493 = arith.mulf %484, %30 : vector<1x128xf32>
    %cst_116 = arith.constant 5.000000e-01 : f32
    %494 = vector.broadcast %cst_116 : f32 to vector<1x128xf32>
    %495 = arith.mulf %494, %484 : vector<1x128xf32>
    %496 = arith.mulf %495, %484 : vector<1x128xf32>
    %497 = arith.mulf %496, %34 : vector<1x128xf32>
    %498 = arith.addf %493, %497 : vector<1x128xf32>
    %cst_117 = arith.constant 0.176776692 : f32
    %499 = vector.broadcast %cst_117 : f32 to vector<1x128xf32>
    %500 = arith.mulf %499, %498 : vector<1x128xf32>
    %cst_118 = arith.constant 9.99999974E-5 : f32
    %501 = vector.broadcast %cst_118 : f32 to vector<1x128xf32>
    %502 = arith.mulf %501, %484 : vector<1x128xf32>
    %503 = arith.mulf %502, %37 : vector<1x128xf32>
    %504 = arith.cmpf ogt, %500, %503 : vector<1x128xf32>
    %505 = arith.andi %446, %504 : vector<1x128xi1>
    %506 = arith.cmpf oge, %500, %492 : vector<1x128xf32>
    %507 = arith.ori %506, %505 : vector<1x128xi1>
    %508 = arith.andi %446, %507 : vector<1x128xi1>
    %509 = arith.select %508, %484, %453 : vector<1x128xi1>, vector<1x128xf32>
    %510 = arith.select %508, %484, %454 : vector<1x128xi1>, vector<1x128xf32>
    %cst_119 = arith.constant dense<true> : vector<1x128xi1>
    %511 = arith.xori %508, %cst_119 : vector<1x128xi1>
    %512 = arith.andi %446, %511 : vector<1x128xi1>
    %513 = arith.mulf %484, %34 : vector<1x128xf32>
    %514 = arith.addf %30, %513 : vector<1x128xf32>
    %cst_120 = arith.constant 0.176776692 : f32
    %515 = vector.broadcast %cst_120 : f32 to vector<1x128xf32>
    %516 = arith.mulf %515, %514 : vector<1x128xf32>
    %517 = math.absf %516 : vector<1x128xf32>
    %cst_121 = arith.constant -0.899999976 : f32
    %518 = vector.broadcast %cst_121 : f32 to vector<1x128xf32>
    %519 = arith.mulf %518, %37 : vector<1x128xf32>
    %520 = arith.cmpf ole, %517, %519 : vector<1x128xf32>
    %521 = arith.andi %512, %520 : vector<1x128xi1>
    %522 = arith.select %521, %484, %444 : vector<1x128xi1>, vector<1x128xf32>
    %cst_122 = arith.constant dense<true> : vector<1x128xi1>
    %523 = arith.xori %521, %cst_122 : vector<1x128xi1>
    %524 = arith.andi %446, %523 : vector<1x128xi1>
    %525 = arith.subf %509, %456 : vector<1x128xf32>
    %526 = arith.mulf %516, %525 : vector<1x128xf32>
    %cst_123 = arith.constant 0.000000e+00 : f32
    %527 = vector.broadcast %cst_123 : f32 to vector<1x128xf32>
    %528 = arith.cmpf oge, %526, %527 : vector<1x128xf32>
    %529 = arith.andi %528, %524 : vector<1x128xi1>
    %530 = arith.andi %512, %529 : vector<1x128xi1>
    %531 = arith.select %530, %456, %509 : vector<1x128xi1>, vector<1x128xf32>
    %532 = arith.select %530, %456, %510 : vector<1x128xi1>, vector<1x128xf32>
    %533 = arith.andi %512, %524 : vector<1x128xi1>
    %534 = arith.select %533, %484, %456 : vector<1x128xi1>, vector<1x128xf32>
    %535 = arith.mulf %534, %34 : vector<1x128xf32>
    %536 = arith.addf %30, %535 : vector<1x128xf32>
    %cst_124 = arith.constant 0.176776692 : f32
    %537 = vector.broadcast %cst_124 : f32 to vector<1x128xf32>
    %538 = arith.mulf %537, %536 : vector<1x128xf32>
    %539 = arith.mulf %531, %34 : vector<1x128xf32>
    %540 = arith.addf %30, %539 : vector<1x128xf32>
    %cst_125 = arith.constant 0.176776692 : f32
    %541 = vector.broadcast %cst_125 : f32 to vector<1x128xf32>
    %542 = arith.mulf %541, %540 : vector<1x128xf32>
    %543 = arith.subf %542, %538 : vector<1x128xf32>
    %544 = math.absf %543 : vector<1x128xf32>
    %cst_126 = arith.constant 9.99999996E-13 : f32
    %545 = vector.broadcast %cst_126 : f32 to vector<1x128xf32>
    %546 = arith.cmpf ogt, %544, %545 : vector<1x128xf32>
    %547 = arith.subf %531, %534 : vector<1x128xf32>
    %548 = arith.mulf %542, %547 : vector<1x128xf32>
    %cst_127 = arith.constant 1.000000e+00 : f32
    %549 = vector.broadcast %cst_127 : f32 to vector<1x128xf32>
    %550 = arith.select %546, %543, %549 : vector<1x128xi1>, vector<1x128xf32>
    %551 = arith.divf %548, %550 : vector<1x128xf32>
    %552 = arith.subf %531, %551 : vector<1x128xf32>
    %553 = arith.addf %534, %531 : vector<1x128xf32>
    %cst_128 = arith.constant 5.000000e-01 : f32
    %554 = vector.broadcast %cst_128 : f32 to vector<1x128xf32>
    %555 = arith.mulf %554, %553 : vector<1x128xf32>
    %556 = arith.select %546, %552, %555 : vector<1x128xi1>, vector<1x128xf32>
    %557 = arith.minimumf %534, %531 : vector<1x128xf32>
    %558 = arith.maximumf %534, %531 : vector<1x128xf32>
    %559 = arith.maximumf %557, %556 : vector<1x128xf32>
    %560 = arith.minimumf %558, %559 : vector<1x128xf32>
    %cst_129 = arith.constant 0.000000e+00 : f32
    %561 = vector.broadcast %cst_129 : f32 to vector<1x128xf32>
    %562 = arith.select %524, %560, %561 : vector<1x128xi1>, vector<1x128xf32>
    %563 = arith.mulf %534, %30 : vector<1x128xf32>
    %cst_130 = arith.constant 5.000000e-01 : f32
    %564 = vector.broadcast %cst_130 : f32 to vector<1x128xf32>
    %565 = arith.mulf %564, %534 : vector<1x128xf32>
    %566 = arith.mulf %565, %534 : vector<1x128xf32>
    %567 = arith.mulf %566, %34 : vector<1x128xf32>
    %568 = arith.addf %563, %567 : vector<1x128xf32>
    %cst_131 = arith.constant 0.176776692 : f32
    %569 = vector.broadcast %cst_131 : f32 to vector<1x128xf32>
    %570 = arith.mulf %569, %568 : vector<1x128xf32>
    %571 = arith.mulf %562, %30 : vector<1x128xf32>
    %cst_132 = arith.constant 5.000000e-01 : f32
    %572 = vector.broadcast %cst_132 : f32 to vector<1x128xf32>
    %573 = arith.mulf %572, %562 : vector<1x128xf32>
    %574 = arith.mulf %573, %562 : vector<1x128xf32>
    %575 = arith.mulf %574, %34 : vector<1x128xf32>
    %576 = arith.addf %571, %575 : vector<1x128xf32>
    %cst_133 = arith.constant 0.176776692 : f32
    %577 = vector.broadcast %cst_133 : f32 to vector<1x128xf32>
    %578 = arith.mulf %577, %576 : vector<1x128xf32>
    %cst_134 = arith.constant 9.99999974E-5 : f32
    %579 = vector.broadcast %cst_134 : f32 to vector<1x128xf32>
    %580 = arith.mulf %579, %562 : vector<1x128xf32>
    %581 = arith.mulf %580, %37 : vector<1x128xf32>
    %582 = arith.cmpf ogt, %578, %581 : vector<1x128xf32>
    %583 = arith.andi %524, %582 : vector<1x128xi1>
    %584 = arith.cmpf oge, %578, %570 : vector<1x128xf32>
    %585 = arith.ori %584, %583 : vector<1x128xi1>
    %586 = arith.andi %524, %585 : vector<1x128xi1>
    %587 = arith.select %586, %562, %531 : vector<1x128xi1>, vector<1x128xf32>
    %588 = arith.select %586, %562, %532 : vector<1x128xi1>, vector<1x128xf32>
    %cst_135 = arith.constant dense<true> : vector<1x128xi1>
    %589 = arith.xori %586, %cst_135 : vector<1x128xi1>
    %590 = arith.andi %524, %589 : vector<1x128xi1>
    %591 = arith.mulf %562, %34 : vector<1x128xf32>
    %592 = arith.addf %30, %591 : vector<1x128xf32>
    %cst_136 = arith.constant 0.176776692 : f32
    %593 = vector.broadcast %cst_136 : f32 to vector<1x128xf32>
    %594 = arith.mulf %593, %592 : vector<1x128xf32>
    %595 = math.absf %594 : vector<1x128xf32>
    %cst_137 = arith.constant -0.899999976 : f32
    %596 = vector.broadcast %cst_137 : f32 to vector<1x128xf32>
    %597 = arith.mulf %596, %37 : vector<1x128xf32>
    %598 = arith.cmpf ole, %595, %597 : vector<1x128xf32>
    %599 = arith.andi %590, %598 : vector<1x128xi1>
    %600 = arith.select %599, %562, %522 : vector<1x128xi1>, vector<1x128xf32>
    %cst_138 = arith.constant dense<true> : vector<1x128xi1>
    %601 = arith.xori %599, %cst_138 : vector<1x128xi1>
    %602 = arith.andi %524, %601 : vector<1x128xi1>
    %603 = arith.subf %587, %534 : vector<1x128xf32>
    %604 = arith.mulf %594, %603 : vector<1x128xf32>
    %cst_139 = arith.constant 0.000000e+00 : f32
    %605 = vector.broadcast %cst_139 : f32 to vector<1x128xf32>
    %606 = arith.cmpf oge, %604, %605 : vector<1x128xf32>
    %607 = arith.andi %606, %602 : vector<1x128xi1>
    %608 = arith.andi %590, %607 : vector<1x128xi1>
    %609 = arith.select %608, %534, %587 : vector<1x128xi1>, vector<1x128xf32>
    %610 = arith.select %608, %534, %588 : vector<1x128xi1>, vector<1x128xf32>
    %611 = arith.ori %602, %216 : vector<1x128xi1>
    %612 = arith.select %611, %610, %600 : vector<1x128xi1>, vector<1x128xf32>
    %613 = arith.select %611, %609, %600 : vector<1x128xi1>, vector<1x128xf32>
    %614 = vector.broadcast %612 : vector<1x128xf32> to vector<16x128xf32>
    %615 = arith.mulf %614, %26 : vector<16x128xf32>
    %cst_140 = arith.constant dense<0.000000e+00> : vector<16xf32>
    %616 = vector.multi_reduction <add>, %615, %cst_140 [1] : vector<16x128xf32> to vector<16xf32>
    %617 = vector.shape_cast %616 : vector<16xf32> to vector<16x1xf32>
    %618 = vector.broadcast %613 : vector<1x128xf32> to vector<16x128xf32>
    %619 = arith.mulf %618, %26 : vector<16x128xf32>
    %cst_141 = arith.constant dense<0.000000e+00> : vector<16xf32>
    %620 = vector.multi_reduction <add>, %619, %cst_141 [1] : vector<16x128xf32> to vector<16xf32>
    %621 = vector.shape_cast %620 : vector<16xf32> to vector<16x1xf32>
    %c0_142 = arith.constant 0 : index
    %c0_143 = arith.constant 0 : index
    %622 = vector.load %arg2[%c0_142, %c0_143] : memref<16x32xf32, #tpu.memory_space<vmem>>, vector<16x32xf32>
    %c0_144 = arith.constant 0 : index
    %c0_145 = arith.constant 0 : index
    %623 = vector.load %arg1[%c0_144, %c0_145] : memref<16x32xf32, #tpu.memory_space<vmem>>, vector<16x32xf32>
    %624 = vector.broadcast %617 : vector<16x1xf32> to vector<16x32xf32>
    %625 = arith.mulf %624, %622 : vector<16x32xf32>
    %626 = arith.addf %623, %625 : vector<16x32xf32>
    %c0_146 = arith.constant 0 : index
    %c0_147 = arith.constant 0 : index
    %627 = vector.load %arg5[%c0_146, %c0_147] : memref<16x32xf32, #tpu.memory_space<vmem>>, vector<16x32xf32>
    tpu.vector_store %arg5[%c0_146, %c0_147], %626 {strides = array<i32>} : memref<16x32xf32, #tpu.memory_space<vmem>>, vector<16x32xf32>,
    %628 = vector.broadcast %621 : vector<16x1xf32> to vector<16x32xf32>
    %629 = arith.mulf %628, %622 : vector<16x32xf32>
    %c0_148 = arith.constant 0 : index
    %c0_149 = arith.constant 0 : index
    %630 = vector.load %arg6[%c0_148, %c0_149] : memref<16x32xf32, #tpu.memory_space<vmem>>, vector<16x32xf32>
    tpu.vector_store %arg6[%c0_148, %c0_149], %629 {strides = array<i32>} : memref<16x32xf32, #tpu.memory_space<vmem>>, vector<16x32xf32>,
    return
  }
  func.func @transform_0(%arg0: i32) -> (i32, i32) {
    %c0_i32 = arith.constant 0 : i32
    %c0_i32_0 = arith.constant 0 : i32
    return %arg0, %c0_i32 : i32, i32
  }
  func.func @transform_1(%arg0: i32) -> (i32, i32) {
    %c0_i32 = arith.constant 0 : i32
    %c0_i32_0 = arith.constant 0 : i32
    return %arg0, %c0_i32 : i32, i32
  }
  func.func @transform_2(%arg0: i32) -> (i32, i32) {
    %c0_i32 = arith.constant 0 : i32
    %c0_i32_0 = arith.constant 0 : i32
    return %arg0, %c0_i32 : i32, i32
  }
  func.func @transform_3(%arg0: i32) -> (i32, i32) {
    %c0_i32 = arith.constant 0 : i32
    %c0_i32_0 = arith.constant 0 : i32
    return %arg0, %c0_i32 : i32, i32
  }
  func.func @transform_4(%arg0: i32) -> (i32, i32) {
    %c0_i32 = arith.constant 0 : i32
    %c0_i32_0 = arith.constant 0 : i32
    return %arg0, %c0_i32 : i32, i32
  }
  func.func @transform_5(%arg0: i32) -> (i32, i32) {
    %c0_i32 = arith.constant 0 : i32
    %c0_i32_0 = arith.constant 0 : i32
    return %arg0, %c0_i32 : i32, i32
  }
}

</mosaic_0001>

<bundles_post_ra>
// kernel: line_search_pallas.1
= control target key start
LH: loop header
LB: loop body
LE: loop exit
PB: predicated region body
PF: predicated region fallthrough
CT: control target
= control target key end

     0   :  { %11 = vsyncpa [#allocation3], 0  ;;  %s1590_s0 = inlined_call_operand.hbm [shape: f32[16,32], index: 0, kind: input, shape index: {}]   ;;  %s1591_s1 = inlined_call_operand.hbm [shape: f32[16,32], index: 1, kind: input, shape index: {}]   ;;  %s1592_s2 = inlined_call_operand.hbm [shape: f32[16,32], index: 2, kind: input, shape index: {}]   ;;  %s1593_s3 = inlined_call_operand.hbm [shape: f32[16,32], index: 3, kind: input, shape index: {}]   ;;  %s1594_s4 = inlined_call_operand.hbm [shape: f32[16,32], index: 4, kind: output, shape index: {0}]   ;;  %s1595_s5 = inlined_call_operand.hbm [shape: f32[16,32], index: 5, kind: output, shape index: {1}]  }
   0x1   :  { %12 = vsyncpa [#allocation6], 0 }
   0x2   :  { %13 = vsyncpa [#allocation9], 0 }
   0x3   :  { %14 = vsyncpa [#allocation4], 0 }
   0x4   :  { %15 = vsyncpa [#allocation12], 0  ;;  %s822_s18 = smov [#allocation5]   ;;  %s823_s20 = smov [#allocation2]  }
   0x5   :  { %s33_s19 = sshll.u32 %s822_s18, 4  ;;  %s21_s21 = sshll.u32 %s823_s20, 4  ;;  %s34_s19 = int_to_ptr.vmem [resolvable:$true] %s33_s19  ;;  %s863_s21 = int_to_ptr.vmem [resolvable:$true] %s21_s21 }
   0x6   :  { %s680_s24 = scalar_lea.hbm %s1591_s1, 256 }
   0x7   :  { %p681_p0 = scmp.ne.s32.totalorder %s1591_s1, %s680_s24  ;;  %p684_p1 = scmp.lt.u32.totalorder %s680_s24, %s1591_s1 }
   0x9   :  { %p686_p2 = pnand %p684_p1, %p681_p0 }
   0xb   :  { %689 = shalt.err (!%p686_p2)
}
   0xc   :  { %s690_s29 = scalar_lea.vmem %s34_s19, 256  ;;  %p695_p4 = scmp.lt.s32.totalorder %s34_s19, %s34_s19 }
   0xd   :  { %p691_p3 = scmp.ne.s32.totalorder %s34_s19, %s690_s29  ;;  %p696_p5 = scmp.lt.s32.totalorder %s690_s29, %s690_s29 }
   0xf   :  { %p697_p6 = por %p696_p5, %p695_p4 }
  0x11   :  { %p698_p7 = pnand %p697_p6, %p691_p3 }
  0x13   :  { %701 = shalt.err (!%p698_p7)
}
  0x14   :  { %s824_s30 = smov 128   ;;  %s825_s6 = smov 8  }
  0x15   :  { %39 = dma.hbm_to_vmem [thread:$0]  %s1591_s1, 256, %s34_s19, [#allocation6], %s824_s30, %s824_s30, %s825_s6  }
  0x16   :  { %s702_s11 = scalar_lea.hbm %s1590_s0, 256 }
  0x17   :  { %p703_p8 = scmp.ne.s32.totalorder %s1590_s0, %s702_s11  ;;  %p706_p9 = scmp.lt.u32.totalorder %s702_s11, %s1590_s0 }
  0x19   :  { %p708_p10 = pnand %p706_p9, %p703_p8 }
  0x1b   :  { %711 = shalt.err (!%p708_p10)
}
  0x1c   :  { %s712_s16 = scalar_lea.vmem %s863_s21, 256  ;;  %p717_p12 = scmp.lt.s32.totalorder %s863_s21, %s863_s21 }
  0x1d   :  { %p713_p11 = scmp.ne.s32.totalorder %s863_s21, %s712_s16  ;;  %p718_p13 = scmp.lt.s32.totalorder %s712_s16, %s712_s16 }
  0x1f   :  { %p719_p0 = por %p718_p13, %p717_p12 }
  0x21   :  { %p720_p1 = pnand %p719_p0, %p713_p11 }
  0x23   :  { %723 = shalt.err (!%p720_p1)
}
  0x24   :  { %27 = dma.hbm_to_vmem [thread:$0]  %s1590_s0, 256, %s863_s21, [#allocation3], %s824_s30, %s824_s30, %s825_s6  }
  0x25   :  { %s826_s18 = smov [#allocation7]   ;;  %s827_s20 = smov [#allocation8]  }
  0x26   :  { %s45_s19 = sshll.u32 %s826_s18, 4  ;;  %s57_s22 = sshll.u32 %s827_s20, 4  ;;  %s46_s19 = int_to_ptr.vmem [resolvable:$true] %s45_s19  ;;  %s900_s22 = int_to_ptr.vmem [resolvable:$true] %s57_s22 }
  0x27   :  { %s724_s25 = scalar_lea.hbm %s1592_s2, 256 }
  0x28   :  { %p725_p2 = scmp.ne.s32.totalorder %s1592_s2, %s724_s25  ;;  %p728_p3 = scmp.lt.u32.totalorder %s724_s25, %s1592_s2 }
  0x2a   :  { %p730_p4 = pnand %p728_p3, %p725_p2 }
  0x2c   :  { %733 = shalt.err (!%p730_p4)
}
  0x2d   :  { %s734_s0 = scalar_lea.vmem %s46_s19, 256  ;;  %p739_p6 = scmp.lt.s32.totalorder %s46_s19, %s46_s19 }
  0x2e   :  { %p735_p5 = scmp.ne.s32.totalorder %s46_s19, %s734_s0  ;;  %p740_p7 = scmp.lt.s32.totalorder %s734_s0, %s734_s0 }
  0x30   :  { %p741_p8 = por %p740_p7, %p739_p6 }
  0x32   :  { %p742_p9 = pnand %p741_p8, %p735_p5 }
  0x34   :  { %745 = shalt.err (!%p742_p9)
}
  0x35   :  { %51 = dma.hbm_to_vmem [thread:$0]  %s1592_s2, 256, %s46_s19, [#allocation6], %s824_s30, %s824_s30, %s825_s6  }
  0x36   :  { %s746_s10 = scalar_lea.hbm %s1593_s3, 256 }
  0x37   :  { %p747_p10 = scmp.ne.s32.totalorder %s1593_s3, %s746_s10  ;;  %p750_p11 = scmp.lt.u32.totalorder %s746_s10, %s1593_s3 }
  0x39   :  { %p752_p12 = pnand %p750_p11, %p747_p10 }
  0x3b   :  { %755 = shalt.err (!%p752_p12)
}
  0x3c   :  { %s756_s15 = scalar_lea.vmem %s900_s22, 256  ;;  %p761_p0 = scmp.lt.s32.totalorder %s900_s22, %s900_s22 }
  0x3d   :  { %p757_p13 = scmp.ne.s32.totalorder %s900_s22, %s756_s15  ;;  %p762_p1 = scmp.lt.s32.totalorder %s756_s15, %s756_s15 }
  0x3f   :  { %p763_p2 = por %p762_p1, %p761_p0 }
  0x41   :  { %p764_p3 = pnand %p763_p2, %p757_p13 }
  0x43   :  { %767 = shalt.err (!%p764_p3)
}
  0x44   :  { %63 = dma.hbm_to_vmem [thread:$0]  %s1593_s3, 256, %s900_s22, [#allocation9], %s824_s30, %s824_s30, %s825_s6  }
  0x45   :  { %812 = dma.done.wait [#allocation3], 256  }
  0x46   :  { %813 = vsyncadd [#allocation3], 4294967040 }
  0x47   :  { %814 = dma.done.wait [#allocation6], 512  }
  0x48   :  { %815 = vsyncadd [#allocation6], 4294966784 }
  0x49   :  { %816 = dma.done.wait [#allocation9], 256  }
  0x4a   :  { %817 = vsyncadd [#allocation9], 4294967040  ;;  %v87_v0 = vld [vmem:[#allocation5] sm:$0xff]  ;;  %v89_v1 = vld [vmem:[#allocation7] sm:$0xff]  ;;  %vm101_vm0 = vcmask 261120   ;;  %v76_v20 = vlaneseq  ;;  %v828_v26 = vmov 0.0  }
  0x4b   :  { %v93_v2 = vld [vmem:[#allocation2] sm:$0xff]  ;;  %v91_v3 = vmul.f32 %v89_v1, %v87_v0  ;;  %v95_v4 = vld [vmem:[#allocation8] sm:$0xff]  ;;  %v88_v5 = vld [vmem:[#allocation5 + $0x8] sm:$0xff]  ;;  %vm829_vm4 = vmmov 1   ;;  %v830_v62 = vmov 1.0   ;;  %s831_s3 = smov [#allocation10]  }
  0x4c   :  { %v90_v6 = vld [vmem:[#allocation7 + $0x8] sm:$0xff]  ;;  %v97_v7 = vsub.f32 %v93_v2, %v95_v4  ;;  %v96_v10 = vld [vmem:[#allocation8 + $0x8] sm:$0xff]  ;;  %v77_v21 = vshrl.u32 %v76_v20, 7  ;;  %v80_v22 = vand.u32 127, %v76_v20  ;;  %s623_s1 = sshll.u32 %s831_s3, 4  ;;  %s832_s17 = smov [#allocation11]   ;;  %s624_s1 = int_to_ptr.vmem [resolvable:$true] %s623_s1 }
  0x4d   :  { %v92_v8 = vmul.f32 %v90_v6, %v88_v5  ;;  %v94_v9 = vld [vmem:[#allocation2 + $0x8] sm:$0xff]  ;;  %v108_v11 = vmul.f32 %v91_v3, %v87_v0  ;;  %s635_s18 = sshll.u32 %s832_s17, 4  ;;  %s768_s19 = scalar_lea.vmem %s624_s1, 256  ;;  %s1551_s18 = int_to_ptr.vmem [resolvable:$true] %s635_s18 }
  0x4e   :  { %v98_v12 = vsub.f32 %v94_v9, %v96_v10  ;;  %v99_v13 = vmul.f32 %v97_v7, %v91_v3  ;;  %v78_v23 = vadd.s32 8, %v77_v21  ;;  %vm81_vm1 = vcmp.eq.s32.totalorder %v77_v21, %v80_v22  ;;  %p769_p4 = scmp.ne.s32.totalorder %s624_s1, %s768_s19  ;;  %p773_p5 = scmp.lt.s32.totalorder %s624_s1, %s624_s1 }
  0x4f   :  { %v109_v14 = vmul.f32 %v92_v8, %v88_v5  ;;  %v110_v15 = vsel %vm101_vm0, %v108_v11, 0.0  ;;  %v942_v27 = vsel %vm81_vm1, 1.0, %v828_v26  ;;  %p774_p6 = scmp.lt.s32.totalorder %s768_s19, %s768_s19 }
  0x50   :  { %v100_v16 = vmul.f32 %v98_v12, %v92_v8  ;;  %111 = vadd.xlane.f32.xlu0 %v110_v15  ;;  %v102_v17 = vsel %vm101_vm0, %v99_v13, 0.0  ;;  %vm82_vm2 = vcmp.eq.s32.totalorder %v78_v23, %v80_v22 }
  0x51   :  { %103 = vadd.xlane.f32.xlu1 %v102_v17  ;;  %v113_v18 = vsel %vm101_vm0, %v109_v14, 0.0  ;;  %v945_v28 = vsel %vm82_vm2, 1.0, %v828_v26  ;;  %p775_p7 = por %p774_p6, %p773_p5 }
  0x52   :  { %v105_v19 = vsel %vm101_vm0, %v100_v16, 0.0 }
  0x53   :  { %p776_p8 = pnand %p775_p7, %p769_p4 }
  0x54   :  { %114 = vadd.xlane.f32.xlu0 %v113_v18 }
  0x55   :  { %106 = vadd.xlane.f32.xlu1 %v105_v19 }
  0xdd   :  { %v112_v24 = vpop.xlane.xlu0 %111 }
  0xde   :  { %v104_v25 = vpop.xlane.xlu1 %103  ;;  %v134_v30 = vmul.f32 %v942_v27, %v112_v24 }
  0xdf   :  { %v125_v33 = vmul.f32 %v942_v27, %v104_v25 }
  0xe1   :  { %v115_v29 = vpop.xlane.xlu0 %114 }
  0xe2   :  { %v135_v31 = vmul.f32 %v945_v28, %v115_v29  ;;  %v107_v32 = vpop.xlane.xlu1 %106 }
  0xe3   :  { %v126_v34 = vmul.f32 %v945_v28, %v107_v32 }
  0xe4   :  { %v136_v35 = vadd.f32 %v135_v31, %v134_v30 }
  0xe5   :  { %v127_v36 = vadd.f32 %v126_v34, %v125_v33 }
  0xe6   :  { %v137_v37 = vrot.slane %v136_v35, 4 }
  0xe7   :  { %v128_v38 = vrot.slane %v127_v36, 4 }
  0xe8   :  { %v138_v39 = vadd.f32 %v137_v37, %v136_v35 }
  0xe9   :  { %v129_v40 = vadd.f32 %v128_v38, %v127_v36 }
  0xea   :  { %v139_v41 = vrot.slane %v138_v39, 2 }
  0xeb   :  { %v130_v42 = vrot.slane %v129_v40, 2 }
  0xec   :  { %v140_v43 = vadd.f32 %v139_v41, %v138_v39 }
  0xed   :  { %v131_v44 = vadd.f32 %v130_v42, %v129_v40 }
  0xee   :  { %v141_v45 = vrot.slane %v140_v43, 1 }
  0xef   :  { %v132_v46 = vrot.slane %v131_v44, 1 }
  0xf0   :  { %v951_v47 = vadd.f32 %v141_v45, %v140_v43 }
  0xf1   :  { %v953_v48 = vadd.f32 %v132_v46, %v131_v44 }
  0xf2   :  { %v144_v49 = vmul.f32 0.5, %v951_v47 }
  0xf3   :  { %v957_v50 = vmul.f32 0.17677669, %v953_v48  ;;  %v150_v51 = vadd.f32 %v951_v47, %v953_v48 }
  0xf4   :  { %v145_v52 = vadd.f32 %v144_v49, %v953_v48 }
  0xf5   :  { %v151_v53 = vmul.f32 0.17677669, %v150_v51  ;;  %v147_v55 = vmul.f32 0.0001, %v957_v50  ;;  %v964_v57 = vmul.f32 -0.9, %v957_v50 }
  0xf6   :  { %v146_v54 = vmul.f32 0.17677669, %v145_v52 }
  0xf7   :  { %v152_v56 = vand.u32 2147483647, %v151_v53  ;;  %vm159_vm10 = vcmp.ge.f32.partialorder %v151_v53, 0.0 }
  0xf8   :  { %vm148_vm3 = vcmp.gt.f32.partialorder %v146_v54, %v147_v55 }
  0xf9   :  { %vm967_vm5 = vmxor %vm148_vm3, %vm829_vm4  ;;  %vm972_vm6 = vcmp.le.f32.partialorder %v152_v56, %v964_v57 }
  0xfa   :  { %vm155_vm7 = vmand %vm967_vm5, %vm972_vm6 }
  0xfb   :  { %vm157_vm8 = vmxor %vm155_vm7, %vm829_vm4  ;;  %v156_v17 = vsel %vm155_vm7, 1.0, %v828_v26 }
  0xfc   :  { %vm158_vm9 = vmand %vm967_vm5, %vm157_vm8 }
  0xfd   :  { %vm988_vm11 = vmand %vm158_vm9, %vm159_vm10 }
  0xfe   :  { %vm994_vm12 = vmor %vm148_vm3, %vm988_vm11  ;;  %v162_v63 = vsel %vm988_vm11, 0.0, %v830_v62  ;;  %v163_v18 = vsel %vm988_vm11, 1.0, %v828_v26 }
  0xff   :  { %vm164_vm13 = vmxor %vm988_vm11, %vm829_vm4  ;;  %v167_v0 = vmul.f32 2.0, %v162_v63 }
 0x100   :  { %vm1003_vm14 = vmand %vm158_vm9, %vm164_vm13 }
 0x101   :  { %v168_v1 = vmin.f32 %v167_v0, 16.0  ;;  %v166_v21 = vsel %vm1003_vm14, %v162_v63, %v163_v18 }
 0x103   :  { %v1009_v3 = vsel %vm1003_vm14, %v168_v1, %v162_v63 }
 0x104   :  { %v171_v4 = vmul.f32 0.5, %v1009_v3  ;;  %v185_v5 = vmul.f32 %v1009_v3, %v951_v47  ;;  %v170_v8 = vmul.f32 %v1009_v3, %v953_v48  ;;  %v176_v10 = vmul.f32 0.0001, %v1009_v3 }
 0x106   :  { %v172_v6 = vmul.f32 %v171_v4, %v1009_v3  ;;  %v186_v7 = vadd.f32 %v185_v5, %v953_v48  ;;  %v177_v14 = vmul.f32 %v176_v10, %v957_v50 }
 0x108   :  { %v173_v9 = vmul.f32 %v172_v6, %v951_v47  ;;  %v187_v12 = vmul.f32 0.17677669, %v186_v7 }
 0x10a   :  { %v174_v11 = vadd.f32 %v173_v9, %v170_v8  ;;  %v188_v15 = vand.u32 2147483647, %v187_v12 }
 0x10c   :  { %v175_v13 = vmul.f32 0.17677669, %v174_v11  ;;  %vm189_vm13 = vcmp.le.f32.partialorder %v188_v15, %v964_v57 }
 0x10e   :  { %vm178_vm15 = vcmp.gt.f32.partialorder %v175_v13, %v177_v14  ;;  %vm179_vm1 = vcmp.ge.f32.partialorder %v175_v13, %v146_v54 }
 0x10f   :  { %vm180_vm2 = vmor %vm178_vm15, %vm179_vm1 }
 0x110   :  { %vm181_vm3 = vmand %vm1003_vm14, %vm180_vm2  ;;  %vm194_vm2 = vcmp.ge.f32.partialorder %v187_v12, 0.0 }
 0x111   :  { %vm1025_vm8 = vmor %vm994_vm12, %vm181_vm3 }
 0x112   :  { %vm183_vm9 = vmxor %vm181_vm3, %vm829_vm4 }
 0x113   :  { %vm184_vm10 = vmand %vm1003_vm14, %vm183_vm9 }
 0x114   :  { %vm1042_vm12 = vmand %vm184_vm10, %vm189_vm13 }
 0x115   :  { %v191_v20 = vsel %vm1042_vm12, %v1009_v3, %v156_v17  ;;  %vm192_vm15 = vmxor %vm1042_vm12, %vm829_vm4 }
 0x116   :  { %vm193_vm1 = vmand %vm184_vm10, %vm192_vm15 }
 0x117   :  { %vm1054_vm5 = vmand %vm193_vm1, %vm194_vm2 }
 0x118   :  { %vm196_vm6 = vmor %vm1025_vm8, %vm1054_vm5  ;;  %v197_v23 = vsel %vm1054_vm5, %v166_v21, %v1009_v3  ;;  %v198_v43 = vsel %vm1054_vm5, %v1009_v3, %v166_v21 }
 0x119   :  { %vm199_vm7 = vmxor %vm1054_vm5, %vm829_vm4  ;;  %v202_v24 = vmul.f32 2.0, %v197_v23 }
 0x11a   :  { %vm1068_vm11 = vmand %vm193_vm1, %vm199_vm7 }
 0x11b   :  { %v203_v25 = vmin.f32 %v202_v24, 16.0  ;;  %v201_v45 = vsel %vm1068_vm11, %v197_v23, %v198_v43 }
 0x11d   :  { %v204_v29 = vsel %vm1068_vm11, %v203_v25, %v197_v23 }
 0x11e   :  { %v206_v30 = vmul.f32 0.5, %v204_v29  ;;  %v220_v31 = vmul.f32 %v204_v29, %v951_v47  ;;  %v205_v34 = vmul.f32 %v204_v29, %v953_v48  ;;  %v211_v36 = vmul.f32 0.0001, %v204_v29 }
 0x120   :  { %v207_v32 = vmul.f32 %v206_v30, %v204_v29  ;;  %v221_v33 = vadd.f32 %v220_v31, %v953_v48  ;;  %v212_v40 = vmul.f32 %v211_v36, %v957_v50 }
 0x122   :  { %v208_v35 = vmul.f32 %v207_v32, %v951_v47  ;;  %v222_v38 = vmul.f32 0.17677669, %v221_v33 }
 0x124   :  { %v209_v37 = vadd.f32 %v208_v35, %v205_v34  ;;  %v223_v41 = vand.u32 2147483647, %v222_v38  ;;  %vm229_vm7 = vcmp.ge.f32.partialorder %v222_v38, 0.0 }
 0x126   :  { %v210_v39 = vmul.f32 0.17677669, %v209_v37  ;;  %vm224_vm1 = vcmp.le.f32.partialorder %v223_v41, %v964_v57 }
 0x128   :  { %vm213_vm14 = vcmp.gt.f32.partialorder %v210_v39, %v212_v40  ;;  %vm214_vm3 = vcmp.ge.f32.partialorder %v210_v39, %v175_v13  ;;  %v676_v13 = vld [vmem:[#allocation5 + $0x8] sm:$0xff] }
 0x129   :  { %vm215_vm9 = vmor %vm213_vm14, %vm214_vm3 }
 0x12a   :  { %vm216_vm10 = vmand %vm1068_vm11, %vm215_vm9 }
 0x12b   :  { %vm1086_vm13 = vmor %vm196_vm6, %vm216_vm10 }
 0x12c   :  { %vm218_vm12 = vmxor %vm216_vm10, %vm829_vm4 }
 0x12d   :  { %vm219_vm15 = vmand %vm1068_vm11, %vm218_vm12 }
 0x12e   :  { %vm225_vm2 = vmand %vm219_vm15, %vm224_vm1 }
 0x12f   :  { %v1097_v44 = vsel %vm225_vm2, %v204_v29, %v191_v20  ;;  %vm227_vm8 = vmxor %vm225_vm2, %vm829_vm4 }
 0x130   :  { %vm228_vm6 = vmand %vm219_vm15, %vm227_vm8 }
 0x131   :  { %vm1102_vm14 = vmand %vm228_vm6, %vm229_vm7 }
 0x132   :  { %v232_v49 = vsel %vm1102_vm14, %v201_v45, %v204_v29  ;;  %vm234_vm5 = vmxor %vm1102_vm14, %vm829_vm4  ;;  %v233_v5 = vsel %vm1102_vm14, %v204_v29, %v201_v45 }
 0x133   :  { %v237_v51 = vmul.f32 2.0, %v232_v49  ;;  %vm1111_vm3 = vmand %vm228_vm6, %vm234_vm5 }
 0x134   :  { %v236_v8 = vsel %vm1111_vm3, %v232_v49, %v233_v5 }
 0x135   :  { %v238_v52 = vmin.f32 %v237_v51, 16.0 }
 0x137   :  { %v1117_v54 = vsel %vm1111_vm3, %v238_v52, %v232_v49 }
 0x138   :  { %v241_v55 = vmul.f32 0.5, %v1117_v54  ;;  %v255_v56 = vmul.f32 %v1117_v54, %v951_v47  ;;  %v240_v60 = vmul.f32 %v1117_v54, %v953_v48  ;;  %v246_v62 = vmul.f32 0.0001, %v1117_v54 }
 0x13a   :  { %v242_v58 = vmul.f32 %v241_v55, %v1117_v54  ;;  %v256_v59 = vadd.f32 %v255_v56, %v953_v48  ;;  %v247_v2 = vmul.f32 %v246_v62, %v957_v50 }
 0x13c   :  { %v243_v61 = vmul.f32 %v242_v58, %v951_v47  ;;  %v257_v0 = vmul.f32 0.17677669, %v256_v59 }
 0x13e   :  { %v244_v63 = vadd.f32 %v243_v61, %v240_v60  ;;  %v258_v4 = vand.u32 2147483647, %v257_v0  ;;  %vm264_vm5 = vcmp.ge.f32.partialorder %v257_v0, 0.0 }
 0x140   :  { %v245_v1 = vmul.f32 0.17677669, %v244_v63  ;;  %vm259_vm2 = vcmp.le.f32.partialorder %v258_v4, %v964_v57 }
 0x142   :  { %vm248_vm11 = vcmp.gt.f32.partialorder %v245_v1, %v247_v2  ;;  %vm249_vm9 = vcmp.ge.f32.partialorder %v245_v1, %v210_v39 }
 0x143   :  { %vm1129_vm10 = vmor %vm248_vm11, %vm249_vm9 }
 0x144   :  { %vm251_vm12 = vmand %vm1111_vm3, %vm1129_vm10 }
 0x145   :  { %vm253_vm15 = vmxor %vm251_vm12, %vm829_vm4 }
 0x146   :  { %vm254_vm1 = vmand %vm1111_vm3, %vm253_vm15 }
 0x147   :  { %vm1148_vm8 = vmand %vm254_vm1, %vm259_vm2 }
 0x148   :  { %v261_v7 = vsel %vm1148_vm8, %v1117_v54, %v1097_v44  ;;  %vm262_vm6 = vmxor %vm1148_vm8, %vm829_vm4 }
 0x149   :  { %vm263_vm7 = vmand %vm254_vm1, %vm262_vm6 }
 0x14a   :  { %vm1161_vm11 = vmand %vm263_vm7, %vm264_vm5 }
 0x14b   :  { %v1168_v10 = vsel %vm1161_vm11, %v236_v8, %v1117_v54  ;;  %v268_v11 = vsel %vm1161_vm11, %v1117_v54, %v236_v8  ;;  %vm269_vm9 = vmxor %vm1161_vm11, %vm829_vm4 }
 0x14c   :  { %v272_v12 = vmul.f32 2.0, %v1168_v10  ;;  %vm1177_vm15 = vmand %vm263_vm7, %vm269_vm9 }
 0x14d   :  { %v1184_v14 = vsel %vm1177_vm15, %v1168_v10, %v268_v11  ;;  %vm231_vm2 = vmor %vm1086_vm13, %vm1102_vm14 }
 0x14e   :  { %v273_v15 = vmin.f32 %v272_v12, 16.0  ;;  %v275_v16 = vmul.f32 %v1184_v14, %v951_v47  ;;  %v299_v35 = vmul.f32 0.5, %v1184_v14  ;;  %vm252_vm6 = vmor %vm231_vm2, %vm251_vm12  ;;  %v298_v51 = vmul.f32 %v1184_v14, %v953_v48 }
 0x14f   :  { %vm1211_vm7 = vmor %vm252_vm6, %vm1161_vm11 }
 0x150   :  { %v274_v17 = vsel %vm1177_vm15, %v273_v15, %v1168_v10  ;;  %v276_v18 = vadd.f32 %v275_v16, %v953_v48  ;;  %v300_v40 = vmul.f32 %v299_v35, %v1184_v14 }
 0x151   :  { %v278_v19 = vmul.f32 %v274_v17, %v951_v47  ;;  %v284_v26 = vsub.f32 %v274_v17, %v1184_v14  ;;  %v290_v30 = vadd.f32 %v274_v17, %v1184_v14  ;;  %v293_v36 = vmin.f32 %v1184_v14, %v274_v17 }
 0x152   :  { %v277_v21 = vmul.f32 0.17677669, %v276_v18  ;;  %v294_v38 = vmax.f32 %v1184_v14, %v274_v17  ;;  %v301_v42 = vmul.f32 %v300_v40, %v951_v47 }
 0x153   :  { %v279_v20 = vadd.f32 %v278_v19, %v953_v48  ;;  %v291_v34 = vmul.f32 0.5, %v290_v30 }
 0x154   :  { %v302_v55 = vadd.f32 %v301_v42, %v298_v51 }
 0x155   :  { %v280_v22 = vmul.f32 0.17677669, %v279_v20 }
 0x156   :  { %v303_v62 = vmul.f32 0.17677669, %v302_v55 }
 0x157   :  { %v281_v23 = vsub.f32 %v280_v22, %v277_v21  ;;  %v285_v29 = vmul.f32 %v284_v26, %v280_v22 }
 0x159   :  { %v282_v24 = vand.u32 2147483647, %v281_v23 }
 0x15b   :  { %vm283_vm1 = vcmp.gt.f32.partialorder %v282_v24, 1e-12 }
 0x15c   :  { %v286_v25 = vsel %vm283_vm1, %v281_v23, 1.0 }
 0x15d   :  { %666 = vrcp.f32 %v286_v25 }
 0x167   :  { %v667_v31 = vpop.eup %666 }
 0x168   :  { %v288_v32 = vmul.f32 %v667_v31, %v285_v29 }
 0x16a   :  { %v289_v33 = vsub.f32 %v274_v17, %v288_v32 }
 0x16c   :  { %v292_v37 = vsel %vm283_vm1, %v289_v33, %v291_v34 }
 0x16d   :  { %v295_v39 = vmax.f32 %v293_v36, %v292_v37 }
 0x16f   :  { %v296_v41 = vmin.f32 %v294_v38, %v295_v39 }
 0x171   :  { %v297_v45 = vsel %vm1211_vm7, %v296_v41, 0.0 }
 0x172   :  { %v305_v46 = vmul.f32 0.5, %v297_v45  ;;  %v321_v49 = vmul.f32 %v297_v45, %v951_v47  ;;  %v304_v56 = vmul.f32 %v297_v45, %v953_v48  ;;  %v310_v59 = vmul.f32 0.0001, %v297_v45 }
 0x174   :  { %v306_v52 = vmul.f32 %v305_v46, %v297_v45  ;;  %v322_v53 = vadd.f32 %v321_v49, %v953_v48  ;;  %v311_v0 = vmul.f32 %v310_v59, %v957_v50 }
 0x176   :  { %v307_v58 = vmul.f32 %v306_v52, %v951_v47  ;;  %v323_v61 = vmul.f32 0.17677669, %v322_v53 }
 0x178   :  { %v308_v60 = vadd.f32 %v307_v58, %v304_v56  ;;  %v324_v1 = vand.u32 2147483647, %v323_v61 }
 0x17a   :  { %v309_v63 = vmul.f32 0.17677669, %v308_v60  ;;  %vm325_vm9 = vcmp.le.f32.partialorder %v324_v1, %v964_v57 }
 0x17c   :  { %vm312_vm13 = vcmp.gt.f32.partialorder %v309_v63, %v311_v0  ;;  %vm314_vm14 = vcmp.ge.f32.partialorder %v309_v63, %v303_v62 }
 0x17d   :  { %vm313_vm3 = vmand %vm1211_vm7, %vm312_vm13 }
 0x17e   :  { %vm315_vm10 = vmor %vm314_vm14, %vm313_vm3 }
 0x17f   :  { %vm1229_vm12 = vmand %vm1211_vm7, %vm315_vm10 }
 0x180   :  { %v317_v3 = vsel %vm1229_vm12, %v297_v45, %v274_v17  ;;  %v318_v4 = vsel %vm1229_vm12, %v297_v45, %v1168_v10  ;;  %vm319_vm5 = vmxor %vm1229_vm12, %vm829_vm4 }
 0x181   :  { %vm1243_vm11 = vmand %vm1211_vm7, %vm319_vm5  ;;  %v330_v8 = vsub.f32 %v317_v3, %v1184_v14 }
 0x182   :  { %vm326_vm1 = vmand %vm1243_vm11, %vm325_vm9 }
 0x183   :  { %v1256_v9 = vsel %vm326_vm1, %v297_v45, %v261_v7  ;;  %vm328_vm2 = vmxor %vm326_vm1, %vm829_vm4  ;;  %v331_v10 = vmul.f32 %v330_v8, %v323_v61 }
 0x184   :  { %vm1261_vm6 = vmand %vm1211_vm7, %vm328_vm2 }
 0x185   :  { %vm332_vm13 = vcmp.ge.f32.partialorder %v331_v10, 0.0  ;;  %vm337_vm14 = vmand %vm1243_vm11, %vm1261_vm6 }
 0x186   :  { %vm333_vm8 = vmand %vm332_vm13, %vm1261_vm6  ;;  %v1272_v44 = vsel %vm337_vm14, %v297_v45, %v1184_v14 }
 0x187   :  { %vm334_vm3 = vmand %vm1243_vm11, %vm333_vm8  ;;  %v339_v54 = vmul.f32 %v1272_v44, %v951_v47  ;;  %v363_v30 = vmul.f32 0.5, %v1272_v44  ;;  %v362_v41 = vmul.f32 %v1272_v44, %v953_v48 }
 0x188   :  { %v335_v6 = vsel %vm334_vm3, %v1184_v14, %v317_v3  ;;  %v1280_v7 = vsel %vm334_vm3, %v1184_v14, %v318_v4 }
 0x189   :  { %v340_v12 = vadd.f32 %v339_v54, %v953_v48  ;;  %v342_v15 = vmul.f32 %v335_v6, %v951_v47  ;;  %v348_v22 = vsub.f32 %v335_v6, %v1272_v44  ;;  %v354_v24 = vadd.f32 %v1272_v44, %v335_v6 }
 0x18a   :  { %v357_v31 = vmin.f32 %v1272_v44, %v335_v6  ;;  %v358_v33 = vmax.f32 %v1272_v44, %v335_v6  ;;  %v364_v35 = vmul.f32 %v363_v30, %v1272_v44 }
 0x18b   :  { %v343_v16 = vadd.f32 %v342_v15, %v953_v48  ;;  %v341_v17 = vmul.f32 0.17677669, %v340_v12  ;;  %v355_v29 = vmul.f32 0.5, %v354_v24 }
 0x18c   :  { %v365_v38 = vmul.f32 %v364_v35, %v951_v47 }
 0x18d   :  { %v344_v18 = vmul.f32 0.17677669, %v343_v16 }
 0x18e   :  { %v366_v42 = vadd.f32 %v365_v38, %v362_v41 }
 0x18f   :  { %v345_v19 = vsub.f32 %v344_v18, %v341_v17  ;;  %v349_v23 = vmul.f32 %v348_v22, %v344_v18 }
 0x190   :  { %v367_v55 = vmul.f32 0.17677669, %v366_v42 }
 0x191   :  { %v346_v20 = vand.u32 2147483647, %v345_v19 }
 0x193   :  { %vm347_vm7 = vcmp.gt.f32.partialorder %v346_v20, 1e-12 }
 0x194   :  { %v350_v21 = vsel %vm347_vm7, %v345_v19, 1.0 }
 0x195   :  { %668 = vrcp.f32 %v350_v21 }
 0x19f   :  { %v669_v14 = vpop.eup %668 }
 0x1a0   :  { %v352_v25 = vmul.f32 %v669_v14, %v349_v23 }
 0x1a2   :  { %v353_v26 = vsub.f32 %v335_v6, %v352_v25 }
 0x1a4   :  { %v356_v32 = vsel %vm347_vm7, %v353_v26, %v355_v29 }
 0x1a5   :  { %v359_v34 = vmax.f32 %v357_v31, %v356_v32 }
 0x1a7   :  { %v360_v36 = vmin.f32 %v358_v33, %v359_v34 }
 0x1a9   :  { %v361_v37 = vsel %vm1261_vm6, %v360_v36, 0.0 }
 0x1aa   :  { %v369_v39 = vmul.f32 0.5, %v361_v37  ;;  %v385_v40 = vmul.f32 %v361_v37, %v951_v47  ;;  %v368_v46 = vmul.f32 %v361_v37, %v953_v48  ;;  %v374_v51 = vmul.f32 0.0001, %v361_v37 }
 0x1ac   :  { %v370_v43 = vmul.f32 %v369_v39, %v361_v37  ;;  %v386_v45 = vadd.f32 %v385_v40, %v953_v48  ;;  %v375_v58 = vmul.f32 %v374_v51, %v957_v50 }
 0x1ae   :  { %v371_v49 = vmul.f32 %v370_v43, %v951_v47  ;;  %v387_v53 = vmul.f32 0.17677669, %v386_v45 }
 0x1b0   :  { %v372_v52 = vadd.f32 %v371_v49, %v368_v46  ;;  %v388_v59 = vand.u32 2147483647, %v387_v53 }
 0x1b2   :  { %v373_v56 = vmul.f32 0.17677669, %v372_v52  ;;  %vm389_vm13 = vcmp.le.f32.partialorder %v388_v59, %v964_v57 }
 0x1b4   :  { %vm376_vm10 = vcmp.gt.f32.partialorder %v373_v56, %v375_v58  ;;  %vm378_vm12 = vcmp.ge.f32.partialorder %v373_v56, %v367_v55 }
 0x1b5   :  { %vm377_vm5 = vmand %vm1261_vm6, %vm376_vm10 }
 0x1b6   :  { %vm379_vm11 = vmor %vm378_vm12, %vm377_vm5 }
 0x1b7   :  { %vm1305_vm9 = vmand %vm1261_vm6, %vm379_vm11 }
 0x1b8   :  { %v381_v61 = vsel %vm1305_vm9, %v361_v37, %v335_v6  ;;  %v382_v62 = vsel %vm1305_vm9, %v361_v37, %v1280_v7  ;;  %vm383_vm1 = vmxor %vm1305_vm9, %vm829_vm4 }
 0x1b9   :  { %vm1319_vm2 = vmand %vm1261_vm6, %vm383_vm1  ;;  %v394_v0 = vsub.f32 %v381_v61, %v1272_v44 }
 0x1ba   :  { %vm390_vm14 = vmand %vm1319_vm2, %vm389_vm13 }
 0x1bb   :  { %v1328_v1 = vsel %vm390_vm14, %v361_v37, %v1256_v9  ;;  %vm392_vm8 = vmxor %vm390_vm14, %vm829_vm4  ;;  %v395_v2 = vmul.f32 %v394_v0, %v387_v53 }
 0x1bc   :  { %vm1333_vm3 = vmand %vm1261_vm6, %vm392_vm8 }
 0x1bd   :  { %vm396_vm7 = vcmp.ge.f32.partialorder %v395_v2, 0.0  ;;  %vm401_vm10 = vmand %vm1319_vm2, %vm1333_vm3 }
 0x1be   :  { %vm397_vm12 = vmand %vm396_vm7, %vm1333_vm3  ;;  %v1344_v4 = vsel %vm401_vm10, %v361_v37, %v1272_v44 }
 0x1bf   :  { %vm398_vm5 = vmand %vm1319_vm2, %vm397_vm12  ;;  %v403_v5 = vmul.f32 %v1344_v4, %v951_v47  ;;  %v427_v23 = vmul.f32 0.5, %v1344_v4  ;;  %v426_v35 = vmul.f32 %v1344_v4, %v953_v48 }
 0x1c0   :  { %v399_v8 = vsel %vm398_vm5, %v1272_v44, %v381_v61  ;;  %v1352_v9 = vsel %vm398_vm5, %v1272_v44, %v382_v62 }
 0x1c1   :  { %v404_v10 = vadd.f32 %v403_v5, %v953_v48  ;;  %v406_v11 = vmul.f32 %v399_v8, %v951_v47  ;;  %v412_v17 = vsub.f32 %v399_v8, %v1344_v4  ;;  %v418_v19 = vadd.f32 %v1344_v4, %v399_v8 }
 0x1c2   :  { %v421_v24 = vmin.f32 %v1344_v4, %v399_v8  ;;  %v422_v25 = vmax.f32 %v1344_v4, %v399_v8  ;;  %v428_v29 = vmul.f32 %v427_v23, %v1344_v4 }
 0x1c3   :  { %v407_v54 = vadd.f32 %v406_v11, %v953_v48  ;;  %v405_v6 = vmul.f32 0.17677669, %v404_v10  ;;  %v419_v22 = vmul.f32 0.5, %v418_v19 }
 0x1c4   :  { %v429_v32 = vmul.f32 %v428_v29, %v951_v47 }
 0x1c5   :  { %v408_v7 = vmul.f32 0.17677669, %v407_v54 }
 0x1c6   :  { %v430_v38 = vadd.f32 %v429_v32, %v426_v35 }
 0x1c7   :  { %v409_v12 = vsub.f32 %v408_v7, %v405_v6  ;;  %v413_v18 = vmul.f32 %v412_v17, %v408_v7 }
 0x1c8   :  { %v431_v42 = vmul.f32 0.17677669, %v430_v38 }
 0x1c9   :  { %v410_v15 = vand.u32 2147483647, %v409_v12 }
 0x1cb   :  { %vm411_vm6 = vcmp.gt.f32.partialorder %v410_v15, 1e-12 }
 0x1cc   :  { %v414_v16 = vsel %vm411_vm6, %v409_v12, 1.0 }
 0x1cd   :  { %670 = vrcp.f32 %v414_v16 }
 0x1d7   :  { %v671_v44 = vpop.eup %670 }
 0x1d8   :  { %v416_v20 = vmul.f32 %v671_v44, %v413_v18 }
 0x1da   :  { %v417_v21 = vsub.f32 %v399_v8, %v416_v20 }
 0x1dc   :  { %v420_v14 = vsel %vm411_vm6, %v417_v21, %v419_v22 }
 0x1dd   :  { %v423_v26 = vmax.f32 %v421_v24, %v420_v14 }
 0x1df   :  { %v424_v30 = vmin.f32 %v422_v25, %v423_v26 }
 0x1e1   :  { %v425_v31 = vsel %vm1333_vm3, %v424_v30, 0.0 }
 0x1e2   :  { %v433_v33 = vmul.f32 0.5, %v425_v31  ;;  %v449_v34 = vmul.f32 %v425_v31, %v951_v47  ;;  %v432_v39 = vmul.f32 %v425_v31, %v953_v48  ;;  %v438_v41 = vmul.f32 0.0001, %v425_v31 }
 0x1e4   :  { %v434_v36 = vmul.f32 %v433_v33, %v425_v31  ;;  %v450_v37 = vadd.f32 %v449_v34, %v953_v48  ;;  %v439_v49 = vmul.f32 %v438_v41, %v957_v50 }
 0x1e6   :  { %v435_v40 = vmul.f32 %v434_v36, %v951_v47  ;;  %v451_v45 = vmul.f32 0.17677669, %v450_v37 }
 0x1e8   :  { %v436_v43 = vadd.f32 %v435_v40, %v432_v39  ;;  %v452_v51 = vand.u32 2147483647, %v451_v45 }
 0x1ea   :  { %v437_v46 = vmul.f32 0.17677669, %v436_v43  ;;  %vm453_vm7 = vcmp.le.f32.partialorder %v452_v51, %v964_v57 }
 0x1ec   :  { %vm440_vm11 = vcmp.gt.f32.partialorder %v437_v46, %v439_v49  ;;  %vm442_vm9 = vcmp.ge.f32.partialorder %v437_v46, %v431_v42 }
 0x1ed   :  { %vm441_vm1 = vmand %vm1333_vm3, %vm440_vm11 }
 0x1ee   :  { %vm443_vm2 = vmor %vm442_vm9, %vm441_vm1 }
 0x1ef   :  { %vm1377_vm13 = vmand %vm1333_vm3, %vm443_vm2 }
 0x1f0   :  { %v445_v53 = vsel %vm1377_vm13, %v425_v31, %v399_v8  ;;  %v446_v55 = vsel %vm1377_vm13, %v425_v31, %v1352_v9  ;;  %vm447_vm14 = vmxor %vm1377_vm13, %vm829_vm4 }
 0x1f1   :  { %vm1391_vm8 = vmand %vm1333_vm3, %vm447_vm14  ;;  %v458_v58 = vsub.f32 %v445_v53, %v1344_v4 }
 0x1f2   :  { %vm454_vm10 = vmand %vm1391_vm8, %vm453_vm7 }
 0x1f3   :  { %v1400_v59 = vsel %vm454_vm10, %v425_v31, %v1328_v1  ;;  %vm456_vm12 = vmxor %vm454_vm10, %vm829_vm4  ;;  %v459_v60 = vmul.f32 %v458_v58, %v451_v45 }
 0x1f4   :  { %vm1405_vm5 = vmand %vm1333_vm3, %vm456_vm12 }
 0x1f5   :  { %vm460_vm6 = vcmp.ge.f32.partialorder %v459_v60, 0.0  ;;  %vm465_vm11 = vmand %vm1391_vm8, %vm1405_vm5 }
 0x1f6   :  { %vm461_vm9 = vmand %vm460_vm6, %vm1405_vm5  ;;  %v1416_v62 = vsel %vm465_vm11, %v425_v31, %v1344_v4 }
 0x1f7   :  { %vm462_vm1 = vmand %vm1391_vm8, %vm461_vm9  ;;  %v467_v63 = vmul.f32 %v1416_v62, %v951_v47  ;;  %v491_v18 = vmul.f32 0.5, %v1416_v62  ;;  %v490_v29 = vmul.f32 %v1416_v62, %v953_v48 }
 0x1f8   :  { %v463_v0 = vsel %vm462_vm1, %v1344_v4, %v445_v53  ;;  %v1424_v1 = vsel %vm462_vm1, %v1344_v4, %v446_v55  ;;  %v677_v53 = vld [vmem:[#allocation5] sm:$0xff] }
 0x1f9   :  { %v468_v2 = vadd.f32 %v467_v63, %v953_v48  ;;  %v470_v3 = vmul.f32 %v463_v0, %v951_v47  ;;  %v476_v6 = vsub.f32 %v463_v0, %v1416_v62  ;;  %v482_v12 = vadd.f32 %v1416_v62, %v463_v0 }
 0x1fa   :  { %v485_v19 = vmin.f32 %v1416_v62, %v463_v0  ;;  %v486_v20 = vmax.f32 %v1416_v62, %v463_v0  ;;  %v492_v22 = vmul.f32 %v491_v18, %v1416_v62 }
 0x1fb   :  { %v471_v5 = vadd.f32 %v470_v3, %v953_v48  ;;  %v469_v8 = vmul.f32 0.17677669, %v468_v2  ;;  %v483_v17 = vmul.f32 0.5, %v482_v12 }
 0x1fc   :  { %v493_v14 = vmul.f32 %v492_v22, %v951_v47 }
 0x1fd   :  { %v472_v9 = vmul.f32 0.17677669, %v471_v5 }
 0x1fe   :  { %v494_v32 = vadd.f32 %v493_v14, %v490_v29 }
 0x1ff   :  { %v473_v10 = vsub.f32 %v472_v9, %v469_v8  ;;  %v477_v7 = vmul.f32 %v476_v6, %v472_v9 }
 0x200   :  { %v495_v38 = vmul.f32 0.17677669, %v494_v32 }
 0x201   :  { %v474_v11 = vand.u32 2147483647, %v473_v10 }
 0x203   :  { %vm475_vm3 = vcmp.gt.f32.partialorder %v474_v11, 1e-12 }
 0x204   :  { %v478_v54 = vsel %vm475_vm3, %v473_v10, 1.0 }
 0x205   :  { %672 = vrcp.f32 %v478_v54 }
 0x20f   :  { %v673_v4 = vpop.eup %672 }
 0x210   :  { %v480_v15 = vmul.f32 %v673_v4, %v477_v7 }
 0x212   :  { %v481_v16 = vsub.f32 %v463_v0, %v480_v15 }
 0x214   :  { %v484_v44 = vsel %vm475_vm3, %v481_v16, %v483_v17 }
 0x215   :  { %v487_v21 = vmax.f32 %v485_v19, %v484_v44 }
 0x217   :  { %v488_v23 = vmin.f32 %v486_v20, %v487_v21 }
 0x219   :  { %v489_v24 = vsel %vm1405_vm5, %v488_v23, 0.0 }
 0x21a   :  { %v497_v25 = vmul.f32 0.5, %v489_v24  ;;  %v513_v26 = vmul.f32 %v489_v24, %v951_v47  ;;  %v496_v33 = vmul.f32 %v489_v24, %v953_v48  ;;  %v502_v35 = vmul.f32 0.0001, %v489_v24 }
 0x21c   :  { %v498_v30 = vmul.f32 %v497_v25, %v489_v24  ;;  %v514_v31 = vadd.f32 %v513_v26, %v953_v48  ;;  %v503_v40 = vmul.f32 %v502_v35, %v957_v50 }
 0x21e   :  { %v499_v34 = vmul.f32 %v498_v30, %v951_v47  ;;  %v515_v37 = vmul.f32 0.17677669, %v514_v31 }
 0x220   :  { %v500_v36 = vadd.f32 %v499_v34, %v496_v33  ;;  %v516_v41 = vand.u32 2147483647, %v515_v37 }
 0x222   :  { %v501_v39 = vmul.f32 0.17677669, %v500_v36  ;;  %vm517_vm6 = vcmp.le.f32.partialorder %v516_v41, %v964_v57 }
 0x224   :  { %vm504_vm2 = vcmp.gt.f32.partialorder %v501_v39, %v503_v40  ;;  %vm506_vm13 = vcmp.ge.f32.partialorder %v501_v39, %v495_v38 }
 0x225   :  { %vm505_vm14 = vmand %vm1405_vm5, %vm504_vm2 }
 0x226   :  { %vm507_vm8 = vmor %vm506_vm13, %vm505_vm14 }
 0x227   :  { %vm1449_vm7 = vmand %vm1405_vm5, %vm507_vm8 }
 0x228   :  { %v509_v45 = vsel %vm1449_vm7, %v489_v24, %v463_v0  ;;  %v510_v42 = vsel %vm1449_vm7, %v489_v24, %v1424_v1  ;;  %vm511_vm10 = vmxor %vm1449_vm7, %vm829_vm4 }
 0x229   :  { %vm1463_vm12 = vmand %vm1405_vm5, %vm511_vm10  ;;  %v522_v49 = vsub.f32 %v509_v45, %v1416_v62 }
 0x22a   :  { %vm518_vm11 = vmand %vm1463_vm12, %vm517_vm6 }
 0x22b   :  { %v1472_v51 = vsel %vm518_vm11, %v489_v24, %v1400_v59  ;;  %vm520_vm9 = vmxor %vm518_vm11, %vm829_vm4  ;;  %v523_v52 = vmul.f32 %v522_v49, %v515_v37 }
 0x22c   :  { %vm1477_vm1 = vmand %vm1405_vm5, %vm520_vm9 }
 0x22d   :  { %vm524_vm3 = vcmp.ge.f32.partialorder %v523_v52, 0.0  ;;  %vm529_vm2 = vmand %vm1463_vm12, %vm1477_vm1 }
 0x22e   :  { %vm525_vm13 = vmand %vm524_vm3, %vm1477_vm1  ;;  %v1488_v55 = vsel %vm529_vm2, %v489_v24, %v1416_v62 }
 0x22f   :  { %vm526_vm14 = vmand %vm1463_vm12, %vm525_vm13  ;;  %v531_v56 = vmul.f32 %v1488_v55, %v951_v47  ;;  %v555_v7 = vmul.f32 0.5, %v1488_v55  ;;  %v554_v22 = vmul.f32 %v1488_v55, %v953_v48 }
 0x230   :  { %v527_v58 = vsel %vm526_vm14, %v1416_v62, %v509_v45  ;;  %v1496_v59 = vsel %vm526_vm14, %v1416_v62, %v510_v42 }
 0x231   :  { %v532_v60 = vadd.f32 %v531_v56, %v953_v48  ;;  %v534_v61 = vmul.f32 %v527_v58, %v951_v47  ;;  %v540_v8 = vsub.f32 %v527_v58, %v1488_v55  ;;  %v546_v10 = vadd.f32 %v1488_v55, %v527_v58  ;;  %v678_v56 = vld [vmem:[#allocation2 + $0x8] sm:$0xff] }
 0x232   :  { %v549_v12 = vmin.f32 %v1488_v55, %v527_v58  ;;  %v550_v15 = vmax.f32 %v1488_v55, %v527_v58  ;;  %v556_v17 = vmul.f32 %v555_v7, %v1488_v55 }
 0x233   :  { %v535_v63 = vadd.f32 %v534_v61, %v953_v48  ;;  %v533_v0 = vmul.f32 0.17677669, %v532_v60  ;;  %v547_v6 = vmul.f32 0.5, %v546_v10 }
 0x234   :  { %v557_v44 = vmul.f32 %v556_v17, %v951_v47 }
 0x235   :  { %v536_v1 = vmul.f32 0.17677669, %v535_v63 }
 0x236   :  { %v558_v14 = vadd.f32 %v557_v44, %v554_v22 }
 0x237   :  { %v537_v2 = vsub.f32 %v536_v1, %v533_v0  ;;  %v541_v9 = vmul.f32 %v540_v8, %v536_v1 }
 0x238   :  { %v559_v32 = vmul.f32 0.17677669, %v558_v14 }
 0x239   :  { %v538_v3 = vand.u32 2147483647, %v537_v2 }
 0x23b   :  { %vm539_vm5 = vcmp.gt.f32.partialorder %v538_v3, 1e-12 }
 0x23c   :  { %v542_v5 = vsel %vm539_vm5, %v537_v2, 1.0 }
 0x23d   :  { %674 = vrcp.f32 %v542_v5 }
 0x247   :  { %v675_v62 = vpop.eup %674 }
 0x248   :  { %v544_v11 = vmul.f32 %v675_v62, %v541_v9 }
 0x24a   :  { %v545_v54 = vsub.f32 %v527_v58, %v544_v11 }
 0x24c   :  { %v548_v4 = vsel %vm539_vm5, %v545_v54, %v547_v6 }
 0x24d   :  { %v551_v16 = vmax.f32 %v549_v12, %v548_v4 }
 0x24f   :  { %v552_v18 = vmin.f32 %v550_v15, %v551_v16 }
 0x251   :  { %v553_v19 = vsel %vm1477_vm1, %v552_v18, 0.0 }
 0x252   :  { %v561_v20 = vmul.f32 0.5, %v553_v19  ;;  %v577_v21 = vmul.f32 %v553_v19, %v951_v47  ;;  %v560_v25 = vmul.f32 %v553_v19, %v953_v48  ;;  %v566_v29 = vmul.f32 0.0001, %v553_v19 }
 0x254   :  { %v562_v23 = vmul.f32 %v561_v20, %v553_v19  ;;  %v578_v24 = vadd.f32 %v577_v21, %v953_v48  ;;  %v567_v34 = vmul.f32 %v566_v29, %v957_v50 }
 0x256   :  { %v563_v26 = vmul.f32 %v562_v23, %v951_v47  ;;  %v579_v31 = vmul.f32 0.17677669, %v578_v24 }
 0x258   :  { %v564_v30 = vadd.f32 %v563_v26, %v560_v25  ;;  %v580_v35 = vand.u32 2147483647, %v579_v31 }
 0x25a   :  { %v565_v33 = vmul.f32 0.17677669, %v564_v30  ;;  %vm581_vm3 = vcmp.le.f32.partialorder %v580_v35, %v964_v57 }
 0x25c   :  { %vm568_vm8 = vcmp.gt.f32.partialorder %v565_v33, %v567_v34  ;;  %vm570_vm7 = vcmp.ge.f32.partialorder %v565_v33, %v559_v32 }
 0x25d   :  { %vm569_vm10 = vmand %vm1477_vm1, %vm568_vm8 }
 0x25e   :  { %vm571_vm12 = vmor %vm570_vm7, %vm569_vm10 }
 0x25f   :  { %vm1521_vm6 = vmand %vm1477_vm1, %vm571_vm12 }
 0x260   :  { %v573_v47 = vsel %vm1521_vm6, %v553_v19, %v527_v58  ;;  %v574_v50 = vsel %vm1521_vm6, %v553_v19, %v1496_v59  ;;  %vm575_vm11 = vmxor %vm1521_vm6, %vm829_vm4  ;;  %v679_v59 = vld [vmem:[#allocation2] sm:$0xff] }
 0x261   :  { %vm576_vm9 = vmand %vm1477_vm1, %vm575_vm11  ;;  %v586_v36 = vsub.f32 %v573_v47, %v1488_v55 }
 0x262   :  { %vm582_vm2 = vmand %vm576_vm9, %vm581_vm3 }
 0x263   :  { %v583_v37 = vsel %vm582_vm2, %v553_v19, %v1472_v51  ;;  %vm584_vm13 = vmxor %vm582_vm2, %vm829_vm4  ;;  %v587_v38 = vmul.f32 %v586_v36, %v579_v31 }
 0x264   :  { %vm585_vm14 = vmand %vm1477_vm1, %vm584_vm13 }
 0x265   :  { %vm588_vm5 = vcmp.ge.f32.partialorder %v587_v38, 0.0  ;;  %vm593_vm10 = vmor %vm585_vm14, %vm1177_vm15 }
 0x266   :  { %vm589_vm8 = vmand %vm588_vm5, %vm585_vm14 }
 0x267   :  { %vm590_vm7 = vmand %vm576_vm9, %vm589_vm8 }
 0x268   :  { %v592_v39 = vsel %vm590_vm7, %v1488_v55, %v574_v50  ;;  %v591_v57 = vsel %vm590_vm7, %v1488_v55, %v573_v47 }
 0x269   :  { %v594_v40 = vsel %vm593_vm10, %v592_v39, %v583_v37  ;;  %v595_v41 = vsel %vm593_vm10, %v591_v57, %v583_v37 }
 0x26a   :  { %v597_v43 = vmul.f32 %v945_v28, %v594_v40  ;;  %v596_v45 = vmul.f32 %v942_v27, %v594_v40  ;;  %v603_v42 = vmul.f32 %v945_v28, %v595_v41  ;;  %v602_v46 = vmul.f32 %v942_v27, %v595_v41 }
 0x26c   :  { %600 = vadd.xlane.f32.xlu1 %v597_v43  ;;  %598 = vadd.xlane.f32.xlu0 %v596_v45 }
 0x270   :  { %606 = vadd.xlane.f32.xlu1 %v603_v42  ;;  %604 = vadd.xlane.f32.xlu0 %v602_v46 }
 0x2f9   :  { %v601_v49 = vpop.xlane.xlu1 %600  ;;  %v599_v51 = vpop.xlane.xlu0 %598 }
 0x2fa   :  { %v609_v52 = vmul.f32 %v676_v13, %v601_v49  ;;  %v608_v55 = vmul.f32 %v677_v53, %v599_v51 }
 0x2fc   :  { %v611_v58 = vadd.f32 %v678_v56, %v609_v52  ;;  %v610_v60 = vadd.f32 %v679_v59, %v608_v55 }
 0x2fd   :  { %v607_v28 = vpop.xlane.xlu1 %606  ;;  %v605_v61 = vpop.xlane.xlu0 %604 }
 0x2fe   :  { %613 = vst.msk [vmem:[#allocation10 + $0x8] sm:$0xff] %vm101_vm0, %v611_v58  ;;  %612 = vst.msk [vmem:[#allocation10] sm:$0xff] %vm101_vm0, %v610_v60  ;;  %v615_v27 = vmul.f32 %v676_v13, %v607_v28  ;;  %v614_v63 = vmul.f32 %v677_v53, %v605_v61 }
 0x2ff   :  { %779 = shalt.err (!%p776_p8)
}
 0x300   :  { %s780_s23 = scalar_lea.hbm %s1594_s4, 256 }
 0x301   :  { %p781_p9 = scmp.ne.s32.totalorder %s1594_s4, %s780_s23  ;;  %p784_p10 = scmp.lt.u32.totalorder %s780_s23, %s1594_s4 }
 0x303   :  { %p786_p11 = pnand %p784_p10, %p781_p9 }
 0x305   :  { %789 = shalt.err (!%p786_p11)
}
 0x306   :  { %629 = dma.vmem_to_hbm [thread:$0]  %s624_s1, 256, %s1594_s4, [#allocation4], %s824_s30, %s824_s30, %s825_s6   ;;  %617 = vst.msk [vmem:[#allocation11 + $0x8] sm:$0xff] %vm101_vm0, %v615_v27  ;;  %616 = vst.msk [vmem:[#allocation11] sm:$0xff] %vm101_vm0, %v614_v63 }
 0x307   :  { %s790_s0 = scalar_lea.vmem %s1551_s18, 256  ;;  %p795_p13 = scmp.lt.s32.totalorder %s1551_s18, %s1551_s18 }
 0x308   :  { %p791_p12 = scmp.ne.s32.totalorder %s1551_s18, %s790_s0  ;;  %p796_p0 = scmp.lt.s32.totalorder %s790_s0, %s790_s0 }
 0x30a   :  { %p797_p1 = por %p796_p0, %p795_p13 }
 0x30c   :  { %p798_p2 = pnand %p797_p1, %p791_p12 }
 0x30e   :  { %801 = shalt.err (!%p798_p2)
}
 0x30f   :  { %s802_s8 = scalar_lea.hbm %s1595_s5, 256 }
 0x310   :  { %p803_p3 = scmp.ne.s32.totalorder %s1595_s5, %s802_s8  ;;  %p806_p4 = scmp.lt.u32.totalorder %s802_s8, %s1595_s5 }
 0x312   :  { %p808_p5 = pnand %p806_p4, %p803_p3 }
 0x314   :  { %811 = shalt.err (!%p808_p5)
}
 0x315   :  { %641 = dma.vmem_to_hbm [thread:$0]  %s1551_s18, 256, %s1595_s5, [#allocation12], %s824_s30, %s824_s30, %s825_s6  }
 0x316   :  { %818 = dma.done.wait [#allocation4], 256  }
 0x317   :  { %819 = vsyncadd [#allocation4], 4294967040 }
 0x318   :  { %820 = dma.done.wait [#allocation12], 256  }
 0x319   :  { %821 = vsyncadd [#allocation12], 4294967040 }
 0x31a   :  { %648 = vsyncpa [#allocation3], 1 }
 0x31b   :  { %649 = vsyncpa [#allocation6], 1 }
 0x31c   :  { %650 = vsyncpa [#allocation9], 1 }
 0x31d   :  { %651 = vsyncpa [#allocation4], 1 }
 0x31e   :  { %652 = vsyncpa [#allocation12], 1 }

</bundles_post_ra>
